<compile_context>
chip_gen: v7x
topology: tpu7x:2x2x1
jax: 0.10.0
libtpu: 0.0.40
codegen_flags: <defaults>
</compile_context>

<pallas_src>
import functools

import numpy as np

import jax
import jax.numpy as jnp
from jax.experimental import pallas as pl
from jax.experimental.pallas import tpu as pltpu

_LANE = 128
_CONV_SPECS = ((32, 8, 4), (64, 4, 2), (64, 3, 1))   # (out_ch, kernel, stride)


def _ru(v, m):
    return -(-v // m) * m


def _conv_out(n, k, s):
    return (n - k) // s + 1


# ------------------------------ fused kernel ------------------------------- #

def _tree_sum(parts):
    """Balanced-tree sum: shortens the serial VPU-add chain of tap partials."""
    parts = list(parts)
    while len(parts) > 1:
        nxt = [parts[i] + parts[i + 1] for i in range(0, len(parts) - 1, 2)]
        if len(parts) % 2:
            nxt.append(parts[-1])
        parts = nxt
    return parts[0]


def _cnn_dqn_kernel(p1_ref, w1_ref, b1_ref, w2_ref, b2_ref, w3_ref, b3_ref,
                    wf1_ref, bf1_ref, wf2_ref, bf2_ref, out_ref,
                    *, conv2_starts, conv2_len, conv3_starts, conv3_len):
    """One sample's full CnnDQN forward; grid axis 0 = batch ("parallel").

    Activations are 2-D (rows = spatial positions, lanes = channels) and never
    leave the core.  conv2/conv3 im2col is a static contiguous row slice per
    tap (see _derive_geometry), so every dot below has dense K and there are
    no gather matrices.  Junk slice rows (wo >= w_out) only ever land on junk
    output rows and are never read by the next layer (asserted at prep time).
    """
    cdt = w1_ref.dtype  # bf16 matmul operands; accumulation always f32.

    def mm(a, b):
        return jnp.dot(a, b, preferred_element_type=jnp.float32)

    # conv1 + ReLU: one dense GEMM on the parity-ordered im2col patches.
    a1 = jnp.maximum(mm(p1_ref[0], w1_ref[...]) + b1_ref[...], 0.0)        # (64, 32) f32

    # conv2 + ReLU: 16 taps; each tap's row-gather is a contiguous slice of a1
    # (dense K = 32, no zero-padded lanes, no gather matmuls, no extra casts).
    y2 = _tree_sum(mm(a1[s:s + conv2_len, :].astype(cdt), w2_ref[t])
                   for t, s in enumerate(conv2_starts))
    a2 = jnp.maximum(y2 + b2_ref[...], 0.0)                                # (11, 64) f32

    # conv3 + ReLU (3x3 -> 1x1): tap (di, dj) reads a2 row di*wb + dj (K = 64).
    y3 = _tree_sum(mm(a2[s:s + conv3_len, :].astype(cdt), w3_ref[t])
                   for t, s in enumerate(conv3_starts))
    a3 = jnp.maximum(y3 + b3_ref[...], 0.0)                                # (1, 64) f32

    # fc1 + ReLU.  h3*w3 == 1 => PyTorch's NCHW flatten is the identity, so the
    # v2 spatial-select gather (sf) is specialized away.
    a4 = jnp.maximum(mm(a3.astype(cdt), wf1_ref[...]) + bf1_ref[...], 0.0)  # (1, 512)

    # fc2 (no ReLU).  Output lanes zero-padded to 128 -> one dense store.
    out_ref[0] = (mm(a4.astype(cdt), wf2_ref[...]) + bf2_ref[...]).astype(out_ref.dtype)


# ------------------------- geometry / prep (host side) --------------------- #

def feature_size(input_shape):
    _, h, w = input_shape
    h1, w1 = _conv_out(h, 8, 4), _conv_out(w, 8, 4)
    h2, w2 = _conv_out(h1, 4, 2), _conv_out(w1, 4, 2)
    h3, w3 = _conv_out(h2, 3, 1), _conv_out(w2, 3, 1)
    return 64 * h3 * w3


def _derive_geometry(input_shape):
    """Static row layouts + slice tables that make im2col a contiguous slice."""
    c_in, h0, w0 = input_shape
    (c1, k1, s1), (c2, k2, s2), (c3, k3, s3) = _CONV_SPECS
    h1, w1 = _conv_out(h0, k1, s1), _conv_out(w0, k1, s1)
    h2, w2 = _conv_out(h1, k2, s2), _conv_out(w1, k2, s2)
    h3, w3 = _conv_out(h2, k3, s3), _conv_out(w2, k3, s3)
    assert min(h1, w1, h2, w2, h3, w3) > 0, "input too small for the conv stack"
    assert h1 % s2 == 0 and w1 % s2 == 0, "parity-slice trick needs s2 | conv1 output"
    assert h3 == 1 and w3 == 1, "kernel specializes fc1 to h3*w3 == 1 (feature_size==64)"

    hb, wb = h1 // s2, w1 // s2
    # Parity-grouped conv1 output row order:
    #   row(h, w) = ((h%s2)*s2 + w%s2)*hb*wb + (h//s2)*wb + (w//s2)
    perm = np.zeros(h1 * w1, np.int32)          # perm[new_row] = old (h-major) row
    for i in range(h1):
        for j in range(w1):
            p = ((i % s2) * s2 + (j % s2)) * (hb * wb) + (i // s2) * wb + (j // s2)
            perm[p] = i * w1 + j

    # conv2: tap (di, dj) reads a1[start : start+len2]; output position (ho, wo)
    # sits at slice row ho*wb + wo (rows with wo >= w2 are junk).
    starts2 = tuple(((di % s2) * s2 + (dj % s2)) * (hb * wb)
                    + (di // s2) * wb + (dj // s2)
                    for di in range(k2) for dj in range(k2))
    len2 = (h2 - 1) * wb + w2
    # conv3 (stride 1): tap (di, dj) reads a2[di*wb + dj : + len3].
    starts3 = tuple(di * wb + dj for di in range(k3) for dj in range(k3))
    len3 = (h3 - 1) * wb + w3

    m1 = _ru(max(h1 * w1, max(starts2) + len2), 8)
    assert max(starts3) + len3 <= len2

    # Brute-force validation of the slice-gather == im2col gather invariant,
    # and that conv3 only ever reads real (non-junk) conv2 output rows.
    for di in range(k2):
        for dj in range(k2):
            s = starts2[di * k2 + dj]
            for ho in range(h2):
                for wo in range(w2):
                    assert perm[s + ho * wb + wo] == (ho * s2 + di) * w1 + (wo * s2 + dj)
    real2 = {ho * wb + wo for ho in range(h2) for wo in range(w2)}
    for s in starts3:
        for ho in range(h3):
            for wo in range(w3):
                assert s + ho * wb + wo in real2

    return dict(c_in=c_in, k1=k1, s1=s1, hw1=(h1, w1), hw2=(h2, w2), hw3=(h3, w3),
                row_perm=perm, m1=m1,
                conv2_starts=starts2, conv2_len=len2,
                conv3_starts=starts3, conv3_len=len3)


def init_params(key, input_shape, num_actions):
    """PyTorch-style uniform(+-1/sqrt(fan_in)) params (Linear weights stored (in, out))."""
    c_in = input_shape[0]
    fsize = feature_size(input_shape)

    def uinit(k, shape, fan_in):
        bound = 1.0 / float(np.sqrt(float(fan_in)))
        return jax.random.uniform(k, shape, jnp.float32, -bound, bound)

    ks = jax.random.split(key, 10)
    return {
        "conv1_w": uinit(ks[0], (32, c_in, 8, 8), c_in * 8 * 8),
        "conv1_b": uinit(ks[1], (32,), c_in * 8 * 8),
        "conv2_w": uinit(ks[2], (64, 32, 4, 4), 32 * 4 * 4),
        "conv2_b": uinit(ks[3], (64,), 32 * 4 * 4),
        "conv3_w": uinit(ks[4], (64, 64, 3, 3), 64 * 3 * 3),
        "conv3_b": uinit(ks[5], (64,), 64 * 3 * 3),
        "fc1_w": uinit(ks[6], (fsize, 512), fsize),
        "fc1_b": uinit(ks[7], (512,), fsize),
        "fc2_w": uinit(ks[8], (512, num_actions), 512),
        "fc2_b": uinit(ks[9], (512,), 512)[:num_actions] * 0 + uinit(ks[9], (num_actions,), 512),
    }


def prepare_params(params, input_shape, num_actions, compute_dtype=jnp.bfloat16):
    """Repack PyTorch-layout parameters into dense, GEMM-ready kernel operands."""
    geo = _derive_geometry(input_shape)
    c_in = input_shape[0]
    (c1, k1, _), (c2, k2, _), (c3, k3, _) = _CONV_SPECS
    hidden = params["fc1_b"].shape[0]
    ap = _ru(num_actions, _LANE)
    cdt = compute_dtype

    def conv_taps(w):   # (cout, cin, k, k) -> (k*k, cin, cout); tap index = di*k + dj
        cout, cin, k, _ = w.shape
        return jnp.transpose(w, (2, 3, 1, 0)).reshape(k * k, cin, cout)

    def bias_row(b, width=None):
        width = b.shape[0] if width is None else width
        return jnp.pad(b, (0, width - b.shape[0])).reshape(1, width).astype(jnp.float32)

    # conv1 as one GEMM: weight rows ordered (di, dj, cin) to match the patches.
    w1m = jnp.transpose(params["conv1_w"], (2, 3, 1, 0)).reshape(k1 * k1 * c_in, c1)

    fsize = params["fc1_w"].shape[0]
    assert fsize == c3, "h3*w3==1 => fc1 input == conv3 channels (NCHW flatten is identity)"

    # Invariant (relied on by the wrapper slice): padded fc2 lanes are zero.
    wf2 = jnp.pad(params["fc2_w"], ((0, 0), (0, ap - num_actions)))
    bf2 = bias_row(params["fc2_b"], ap)

    prep = {
        "w1": w1m.astype(cdt), "b1": bias_row(params["conv1_b"]),
        "w2": conv_taps(params["conv2_w"]).astype(cdt), "b2": bias_row(params["conv2_b"]),
        "w3": conv_taps(params["conv3_w"]).astype(cdt), "b3": bias_row(params["conv3_b"]),
        "wf1": params["fc1_w"].astype(cdt), "bf1": bias_row(params["fc1_b"]),
        "wf2": wf2.astype(cdt), "bf2": bf2,
    }
    return geo, prep


# ------------------------------ forward wrapper ----------------------------- #

def _conv1_patches(x, geo, cdt):
    """(N, C, H, W) NCHW -> (N, m1, k1*k1*C) im2col patches, rows in the
    parity-grouped order the kernel's conv2 slice-gathers expect."""
    n = x.shape[0]
    k1, s1 = geo["k1"], geo["s1"]
    h1, w1 = geo["hw1"]
    xh = jnp.transpose(x, (0, 2, 3, 1))                        # NHWC
    cols = [xh[:, di:di + s1 * (h1 - 1) + 1:s1, dj:dj + s1 * (w1 - 1) + 1:s1, :]
            for di in range(k1) for dj in range(k1)]
    p = jnp.concatenate(cols, axis=-1).reshape(n, h1 * w1, -1)  # cols ordered (di, dj, c)
    p = jnp.take(p, geo["row_perm"], axis=1)                    # parity row order
    p = jnp.pad(p, ((0, 0), (0, geo["m1"] - h1 * w1), (0, 0)))  # zero pad rows (finite)
    return p.astype(cdt)


def _broadcast_spec(shape):
    zeros = (0,) * len(shape)
    return pl.BlockSpec(shape, lambda i: zeros)


def cnn_dqn_forward(geo, prep, x, *, num_actions):
    """x: (N, C, H, W) float32 NCHW -> (N, num_actions) float32 Q-values."""
    n = x.shape[0]
    cdt = prep["w1"].dtype
    ap = prep["wf2"].shape[1]

    p1 = _conv1_patches(x, geo, cdt)                           # (N, m1, k1*k1*C)

    names = ("w1", "b1", "w2", "b2", "w3", "b3", "wf1", "bf1", "wf2", "bf2")
    weights = tuple(prep[k] for k in names)

    kernel = functools.partial(
        _cnn_dqn_kernel,
        conv2_starts=geo["conv2_starts"], conv2_len=geo["conv2_len"],
        conv3_starts=geo["conv3_starts"], conv3_len=geo["conv3_len"])

    hidden = prep["wf1"].shape[1]
    flops_per_sample = 2 * (
        geo["m1"] * prep["w1"].shape[0] * prep["w1"].shape[1]
        + len(geo["conv2_starts"]) * geo["conv2_len"] * prep["w2"].shape[1] * prep["w2"].shape[2]
        + len(geo["conv3_starts"]) * geo["conv3_len"] * prep["w3"].shape[1] * prep["w3"].shape[2]
        + prep["wf1"].shape[0] * hidden + hidden * ap)
    weight_bytes = sum(int(np.prod(a.shape)) * a.dtype.itemsize for a in weights)
    cost = pl.CostEstimate(
        flops=int(n * flops_per_sample),
        transcendentals=0,
        bytes_accessed=int(np.prod(p1.shape)) * p1.dtype.itemsize + weight_bytes + n * ap * 4)

    out = pl.pallas_call(
        kernel,
        grid=(n,),
        out_shape=jax.ShapeDtypeStruct((n, 1, ap), jnp.float32),
        in_specs=[pl.BlockSpec((1,) + p1.shape[1:], lambda i: (i, 0, 0))]
                 + [_broadcast_spec(a.shape) for a in weights],
        out_specs=pl.BlockSpec((1, 1, ap), lambda i: (i, 0, 0)),
        compiler_params=pltpu.CompilerParams(
            dimension_semantics=("parallel",),        # batch across v7x's 2 TCs
            vmem_limit_bytes=32 * 1024 * 1024),        # footprint/step < 1 MiB
        cost_estimate=cost,
    )(p1, *weights)
    # Padded Q lanes are exactly zero (wf2/bf2 zero-padded); slice them off.
    return out[:, 0, :num_actions]


# ------------------------------ reference ---------------------------------- #

def _reference_forward(params, x):
    """Pure-JAX (XLA) reference of the PyTorch CnnDQN forward, for validation."""
    def conv(h, w, b, s):
        y = jax.lax.conv_general_dilated(
            h, w, (s, s), "VALID", dimension_numbers=("NCHW", "OIHW", "NCHW"))
        return jax.nn.relu(y + b.reshape(1, -1, 1, 1))

    h = conv(x, params["conv1_w"], params["conv1_b"], 4)
    h = conv(h, params["conv2_w"], params["conv2_b"], 2)
    h = conv(h, params["conv3_w"], params["conv3_b"], 1)
    h = h.reshape(h.shape[0], -1)                      # NCHW flatten, like x.view
    h = jax.nn.relu(h @ params["fc1_w"] + params["fc1_b"])
    return h @ params["fc2_w"] + params["fc2_b"]


# --------------------------------- main ------------------------------------ #

if __name__ == "__main__":
    key = jax.random.PRNGKey(0)
    k_param, k_x = jax.random.split(key)

    batch = 2
    input_shape = (4, 36, 36)      # conv chain: 36 -> 8 -> 3 -> 1, feature size 64
    num_actions = 6

    params = init_params(k_param, input_shape, num_actions)
    x = jax.random.normal(k_x, (batch,) + input_shape, dtype=jnp.float32)

    geo, prep = prepare_params(params, input_shape, num_actions)
    fwd = jax.jit(functools.partial(cnn_dqn_forward, geo, num_actions=num_actions))

    q = jax.block_until_ready(fwd(prep, x))

    assert q.shape == (batch, num_actions), q.shape
    assert bool(jnp.all(jnp.isfinite(q))), "non-finite output"

    # bf16-tolerance check against the pure-JAX reference of the PyTorch module.
    q_ref = np.asarray(jax.block_until_ready(_reference_forward(params, x)))
    q_np = np.asarray(q)
    err = float(np.max(np.abs(q_np - q_ref)))
    scale = float(np.max(np.abs(q_ref))) + 1e-6
    assert err <= 0.1 * scale + 1e-3, f"mismatch vs reference: err={err}, scale={scale}"

    print("KERNEL_OK")
</pallas_src>

<mosaic_0001>
module attributes {stable_mosaic.version = 11 : i64} {
  func.func @_cnn_dqn_kernel(%arg0: i32, %arg1: memref<1x64x256xbf16, #tpu.memory_space<vmem>>, %arg2: memref<256x32xbf16, #tpu.memory_space<vmem>>, %arg3: memref<1x32xf32, #tpu.memory_space<vmem>>, %arg4: memref<16x32x64xbf16, #tpu.memory_space<vmem>>, %arg5: memref<1x64xf32, #tpu.memory_space<vmem>>, %arg6: memref<9x64x64xbf16, #tpu.memory_space<vmem>>, %arg7: memref<1x64xf32, #tpu.memory_space<vmem>>, %arg8: memref<64x512xbf16, #tpu.memory_space<vmem>>, %arg9: memref<1x512xf32, #tpu.memory_space<vmem>>, %arg10: memref<512x128xbf16, #tpu.memory_space<vmem>>, %arg11: memref<1x128xf32, #tpu.memory_space<vmem>>, %arg12: memref<1x1x128xf32, #tpu.memory_space<vmem>>) attributes {dimension_semantics = [#tpu.dimension_semantics<parallel>], iteration_bounds = array<i64: 2>, scalar_prefetch = 0 : i64, scratch_operands = 0 : i64, tpu.core_type = #tpu.core_type<tc>, window_params = [{transform_indices = @transform_0, window_bounds = array<i64: 1, 64, 256>}, {pipeline_mode = #tpu.pipeline_mode<synchronous>, transform_indices = @transform_1, window_bounds = array<i64: 256, 32>}, {pipeline_mode = #tpu.pipeline_mode<synchronous>, transform_indices = @transform_2, window_bounds = array<i64: 1, 32>}, {pipeline_mode = #tpu.pipeline_mode<synchronous>, transform_indices = @transform_3, window_bounds = array<i64: 16, 32, 64>}, {pipeline_mode = #tpu.pipeline_mode<synchronous>, transform_indices = @transform_4, window_bounds = array<i64: 1, 64>}, {pipeline_mode = #tpu.pipeline_mode<synchronous>, transform_indices = @transform_5, window_bounds = array<i64: 9, 64, 64>}, {pipeline_mode = #tpu.pipeline_mode<synchronous>, transform_indices = @transform_6, window_bounds = array<i64: 1, 64>}, {pipeline_mode = #tpu.pipeline_mode<synchronous>, transform_indices = @transform_7, window_bounds = array<i64: 64, 512>}, {pipeline_mode = #tpu.pipeline_mode<synchronous>, transform_indices = @transform_8, window_bounds = array<i64: 1, 512>}, {pipeline_mode = #tpu.pipeline_mode<synchronous>, transform_indices = @transform_9, window_bounds = array<i64: 512, 128>}, {pipeline_mode = #tpu.pipeline_mode<synchronous>, transform_indices = @transform_10, window_bounds = array<i64: 1, 128>}, {transform_indices = @transform_11, window_bounds = array<i64: 1, 1, 128>}]} {
    %c0 = arith.constant 0 : index
    %c0_0 = arith.constant 0 : index
    %c0_1 = arith.constant 0 : index
    %0 = vector.load %arg1[%c0, %c0_0, %c0_1] : memref<1x64x256xbf16, #tpu.memory_space<vmem>>, vector<1x64x256xbf16>
    %1 = vector.shape_cast %0 : vector<1x64x256xbf16> to vector<64x256xbf16>
    %c0_2 = arith.constant 0 : index
    %c0_3 = arith.constant 0 : index
    %2 = vector.load %arg2[%c0_2, %c0_3] : memref<256x32xbf16, #tpu.memory_space<vmem>>, vector<256x32xbf16>
    %cst = arith.constant dense<0.000000e+00> : vector<64x32xf32>
    %3 = tpu.matmul %1, %2, %cst {dimension_numbers = #tpu.dot_dimension_numbers<[1], [0], [0], [1], [0, 0, 1, 1], [], []>} : vector<64x256xbf16>, vector<256x32xbf16>, vector<64x32xf32> -> vector<64x32xf32>
    %c0_4 = arith.constant 0 : index
    %c0_5 = arith.constant 0 : index
    %4 = vector.load %arg3[%c0_4, %c0_5] : memref<1x32xf32, #tpu.memory_space<vmem>>, vector<1x32xf32>
    %5 = vector.broadcast %4 : vector<1x32xf32> to vector<64x32xf32>
    %6 = arith.addf %3, %5 : vector<64x32xf32>
    %cst_6 = arith.constant 0.000000e+00 : f32
    %7 = vector.broadcast %cst_6 : f32 to vector<64x32xf32>
    %8 = arith.maximumf %6, %7 : vector<64x32xf32>
    %9 = vector.extract_strided_slice %8 {offsets = [0, 0], sizes = [11, 32], strides = [1, 1]} : vector<64x32xf32> to vector<11x32xf32>
    %10 = arith.truncf %9 : vector<11x32xf32> to vector<11x32xbf16>
    %c0_7 = arith.constant 0 : index
    %c0_8 = arith.constant 0 : index
    %c0_9 = arith.constant 0 : index
    %11 = vector.load %arg4[%c0_7, %c0_8, %c0_9] : memref<16x32x64xbf16, #tpu.memory_space<vmem>>, vector<1x32x64xbf16>
    %12 = vector.shape_cast %11 : vector<1x32x64xbf16> to vector<32x64xbf16>
    %cst_10 = arith.constant dense<0.000000e+00> : vector<11x64xf32>
    %13 = tpu.matmul %10, %12, %cst_10 {dimension_numbers = #tpu.dot_dimension_numbers<[1], [0], [0], [1], [0, 0, 1, 1], [], []>} : vector<11x32xbf16>, vector<32x64xbf16>, vector<11x64xf32> -> vector<11x64xf32>
    %14 = vector.extract_strided_slice %8 {offsets = [16, 0], sizes = [11, 32], strides = [1, 1]} : vector<64x32xf32> to vector<11x32xf32>
    %15 = arith.truncf %14 : vector<11x32xf32> to vector<11x32xbf16>
    %c1 = arith.constant 1 : index
    %c0_11 = arith.constant 0 : index
    %c0_12 = arith.constant 0 : index
    %16 = vector.load %arg4[%c1, %c0_11, %c0_12] : memref<16x32x64xbf16, #tpu.memory_space<vmem>>, vector<1x32x64xbf16>
    %17 = vector.shape_cast %16 : vector<1x32x64xbf16> to vector<32x64xbf16>
    %cst_13 = arith.constant dense<0.000000e+00> : vector<11x64xf32>
    %18 = tpu.matmul %15, %17, %cst_13 {dimension_numbers = #tpu.dot_dimension_numbers<[1], [0], [0], [1], [0, 0, 1, 1], [], []>} : vector<11x32xbf16>, vector<32x64xbf16>, vector<11x64xf32> -> vector<11x64xf32>
    %19 = vector.extract_strided_slice %8 {offsets = [1, 0], sizes = [11, 32], strides = [1, 1]} : vector<64x32xf32> to vector<11x32xf32>
    %20 = arith.truncf %19 : vector<11x32xf32> to vector<11x32xbf16>
    %c2 = arith.constant 2 : index
    %c0_14 = arith.constant 0 : index
    %c0_15 = arith.constant 0 : index
    %21 = vector.load %arg4[%c2, %c0_14, %c0_15] : memref<16x32x64xbf16, #tpu.memory_space<vmem>>, vector<1x32x64xbf16>
    %22 = vector.shape_cast %21 : vector<1x32x64xbf16> to vector<32x64xbf16>
    %cst_16 = arith.constant dense<0.000000e+00> : vector<11x64xf32>
    %23 = tpu.matmul %20, %22, %cst_16 {dimension_numbers = #tpu.dot_dimension_numbers<[1], [0], [0], [1], [0, 0, 1, 1], [], []>} : vector<11x32xbf16>, vector<32x64xbf16>, vector<11x64xf32> -> vector<11x64xf32>
    %24 = vector.extract_strided_slice %8 {offsets = [17, 0], sizes = [11, 32], strides = [1, 1]} : vector<64x32xf32> to vector<11x32xf32>
    %25 = arith.truncf %24 : vector<11x32xf32> to vector<11x32xbf16>
    %c3 = arith.constant 3 : index
    %c0_17 = arith.constant 0 : index
    %c0_18 = arith.constant 0 : index
    %26 = vector.load %arg4[%c3, %c0_17, %c0_18] : memref<16x32x64xbf16, #tpu.memory_space<vmem>>, vector<1x32x64xbf16>
    %27 = vector.shape_cast %26 : vector<1x32x64xbf16> to vector<32x64xbf16>
    %cst_19 = arith.constant dense<0.000000e+00> : vector<11x64xf32>
    %28 = tpu.matmul %25, %27, %cst_19 {dimension_numbers = #tpu.dot_dimension_numbers<[1], [0], [0], [1], [0, 0, 1, 1], [], []>} : vector<11x32xbf16>, vector<32x64xbf16>, vector<11x64xf32> -> vector<11x64xf32>
    %29 = vector.extract_strided_slice %8 {offsets = [32, 0], sizes = [11, 32], strides = [1, 1]} : vector<64x32xf32> to vector<11x32xf32>
    %30 = arith.truncf %29 : vector<11x32xf32> to vector<11x32xbf16>
    %c4 = arith.constant 4 : index
    %c0_20 = arith.constant 0 : index
    %c0_21 = arith.constant 0 : index
    %31 = vector.load %arg4[%c4, %c0_20, %c0_21] : memref<16x32x64xbf16, #tpu.memory_space<vmem>>, vector<1x32x64xbf16>
    %32 = vector.shape_cast %31 : vector<1x32x64xbf16> to vector<32x64xbf16>
    %cst_22 = arith.constant dense<0.000000e+00> : vector<11x64xf32>
    %33 = tpu.matmul %30, %32, %cst_22 {dimension_numbers = #tpu.dot_dimension_numbers<[1], [0], [0], [1], [0, 0, 1, 1], [], []>} : vector<11x32xbf16>, vector<32x64xbf16>, vector<11x64xf32> -> vector<11x64xf32>
    %34 = vector.extract_strided_slice %8 {offsets = [48, 0], sizes = [11, 32], strides = [1, 1]} : vector<64x32xf32> to vector<11x32xf32>
    %35 = arith.truncf %34 : vector<11x32xf32> to vector<11x32xbf16>
    %c5 = arith.constant 5 : index
    %c0_23 = arith.constant 0 : index
    %c0_24 = arith.constant 0 : index
    %36 = vector.load %arg4[%c5, %c0_23, %c0_24] : memref<16x32x64xbf16, #tpu.memory_space<vmem>>, vector<1x32x64xbf16>
    %37 = vector.shape_cast %36 : vector<1x32x64xbf16> to vector<32x64xbf16>
    %cst_25 = arith.constant dense<0.000000e+00> : vector<11x64xf32>
    %38 = tpu.matmul %35, %37, %cst_25 {dimension_numbers = #tpu.dot_dimension_numbers<[1], [0], [0], [1], [0, 0, 1, 1], [], []>} : vector<11x32xbf16>, vector<32x64xbf16>, vector<11x64xf32> -> vector<11x64xf32>
    %39 = vector.extract_strided_slice %8 {offsets = [33, 0], sizes = [11, 32], strides = [1, 1]} : vector<64x32xf32> to vector<11x32xf32>
    %40 = arith.truncf %39 : vector<11x32xf32> to vector<11x32xbf16>
    %c6 = arith.constant 6 : index
    %c0_26 = arith.constant 0 : index
    %c0_27 = arith.constant 0 : index
    %41 = vector.load %arg4[%c6, %c0_26, %c0_27] : memref<16x32x64xbf16, #tpu.memory_space<vmem>>, vector<1x32x64xbf16>
    %42 = vector.shape_cast %41 : vector<1x32x64xbf16> to vector<32x64xbf16>
    %cst_28 = arith.constant dense<0.000000e+00> : vector<11x64xf32>
    %43 = tpu.matmul %40, %42, %cst_28 {dimension_numbers = #tpu.dot_dimension_numbers<[1], [0], [0], [1], [0, 0, 1, 1], [], []>} : vector<11x32xbf16>, vector<32x64xbf16>, vector<11x64xf32> -> vector<11x64xf32>
    %44 = vector.extract_strided_slice %8 {offsets = [49, 0], sizes = [11, 32], strides = [1, 1]} : vector<64x32xf32> to vector<11x32xf32>
    %45 = arith.truncf %44 : vector<11x32xf32> to vector<11x32xbf16>
    %c7 = arith.constant 7 : index
    %c0_29 = arith.constant 0 : index
    %c0_30 = arith.constant 0 : index
    %46 = vector.load %arg4[%c7, %c0_29, %c0_30] : memref<16x32x64xbf16, #tpu.memory_space<vmem>>, vector<1x32x64xbf16>
    %47 = vector.shape_cast %46 : vector<1x32x64xbf16> to vector<32x64xbf16>
    %cst_31 = arith.constant dense<0.000000e+00> : vector<11x64xf32>
    %48 = tpu.matmul %45, %47, %cst_31 {dimension_numbers = #tpu.dot_dimension_numbers<[1], [0], [0], [1], [0, 0, 1, 1], [], []>} : vector<11x32xbf16>, vector<32x64xbf16>, vector<11x64xf32> -> vector<11x64xf32>
    %49 = vector.extract_strided_slice %8 {offsets = [4, 0], sizes = [11, 32], strides = [1, 1]} : vector<64x32xf32> to vector<11x32xf32>
    %50 = arith.truncf %49 : vector<11x32xf32> to vector<11x32xbf16>
    %c8 = arith.constant 8 : index
    %c0_32 = arith.constant 0 : index
    %c0_33 = arith.constant 0 : index
    %51 = vector.load %arg4[%c8, %c0_32, %c0_33] : memref<16x32x64xbf16, #tpu.memory_space<vmem>>, vector<1x32x64xbf16>
    %52 = vector.shape_cast %51 : vector<1x32x64xbf16> to vector<32x64xbf16>
    %cst_34 = arith.constant dense<0.000000e+00> : vector<11x64xf32>
    %53 = tpu.matmul %50, %52, %cst_34 {dimension_numbers = #tpu.dot_dimension_numbers<[1], [0], [0], [1], [0, 0, 1, 1], [], []>} : vector<11x32xbf16>, vector<32x64xbf16>, vector<11x64xf32> -> vector<11x64xf32>
    %54 = vector.extract_strided_slice %8 {offsets = [20, 0], sizes = [11, 32], strides = [1, 1]} : vector<64x32xf32> to vector<11x32xf32>
    %55 = arith.truncf %54 : vector<11x32xf32> to vector<11x32xbf16>
    %c9 = arith.constant 9 : index
    %c0_35 = arith.constant 0 : index
    %c0_36 = arith.constant 0 : index
    %56 = vector.load %arg4[%c9, %c0_35, %c0_36] : memref<16x32x64xbf16, #tpu.memory_space<vmem>>, vector<1x32x64xbf16>
    %57 = vector.shape_cast %56 : vector<1x32x64xbf16> to vector<32x64xbf16>
    %cst_37 = arith.constant dense<0.000000e+00> : vector<11x64xf32>
    %58 = tpu.matmul %55, %57, %cst_37 {dimension_numbers = #tpu.dot_dimension_numbers<[1], [0], [0], [1], [0, 0, 1, 1], [], []>} : vector<11x32xbf16>, vector<32x64xbf16>, vector<11x64xf32> -> vector<11x64xf32>
    %59 = vector.extract_strided_slice %8 {offsets = [5, 0], sizes = [11, 32], strides = [1, 1]} : vector<64x32xf32> to vector<11x32xf32>
    %60 = arith.truncf %59 : vector<11x32xf32> to vector<11x32xbf16>
    %c10 = arith.constant 10 : index
    %c0_38 = arith.constant 0 : index
    %c0_39 = arith.constant 0 : index
    %61 = vector.load %arg4[%c10, %c0_38, %c0_39] : memref<16x32x64xbf16, #tpu.memory_space<vmem>>, vector<1x32x64xbf16>
    %62 = vector.shape_cast %61 : vector<1x32x64xbf16> to vector<32x64xbf16>
    %cst_40 = arith.constant dense<0.000000e+00> : vector<11x64xf32>
    %63 = tpu.matmul %60, %62, %cst_40 {dimension_numbers = #tpu.dot_dimension_numbers<[1], [0], [0], [1], [0, 0, 1, 1], [], []>} : vector<11x32xbf16>, vector<32x64xbf16>, vector<11x64xf32> -> vector<11x64xf32>
    %64 = vector.extract_strided_slice %8 {offsets = [21, 0], sizes = [11, 32], strides = [1, 1]} : vector<64x32xf32> to vector<11x32xf32>
    %65 = arith.truncf %64 : vector<11x32xf32> to vector<11x32xbf16>
    %c11 = arith.constant 11 : index
    %c0_41 = arith.constant 0 : index
    %c0_42 = arith.constant 0 : index
    %66 = vector.load %arg4[%c11, %c0_41, %c0_42] : memref<16x32x64xbf16, #tpu.memory_space<vmem>>, vector<1x32x64xbf16>
    %67 = vector.shape_cast %66 : vector<1x32x64xbf16> to vector<32x64xbf16>
    %cst_43 = arith.constant dense<0.000000e+00> : vector<11x64xf32>
    %68 = tpu.matmul %65, %67, %cst_43 {dimension_numbers = #tpu.dot_dimension_numbers<[1], [0], [0], [1], [0, 0, 1, 1], [], []>} : vector<11x32xbf16>, vector<32x64xbf16>, vector<11x64xf32> -> vector<11x64xf32>
    %69 = vector.extract_strided_slice %8 {offsets = [36, 0], sizes = [11, 32], strides = [1, 1]} : vector<64x32xf32> to vector<11x32xf32>
    %70 = arith.truncf %69 : vector<11x32xf32> to vector<11x32xbf16>
    %c12 = arith.constant 12 : index
    %c0_44 = arith.constant 0 : index
    %c0_45 = arith.constant 0 : index
    %71 = vector.load %arg4[%c12, %c0_44, %c0_45] : memref<16x32x64xbf16, #tpu.memory_space<vmem>>, vector<1x32x64xbf16>
    %72 = vector.shape_cast %71 : vector<1x32x64xbf16> to vector<32x64xbf16>
    %cst_46 = arith.constant dense<0.000000e+00> : vector<11x64xf32>
    %73 = tpu.matmul %70, %72, %cst_46 {dimension_numbers = #tpu.dot_dimension_numbers<[1], [0], [0], [1], [0, 0, 1, 1], [], []>} : vector<11x32xbf16>, vector<32x64xbf16>, vector<11x64xf32> -> vector<11x64xf32>
    %74 = vector.extract_strided_slice %8 {offsets = [52, 0], sizes = [11, 32], strides = [1, 1]} : vector<64x32xf32> to vector<11x32xf32>
    %75 = arith.truncf %74 : vector<11x32xf32> to vector<11x32xbf16>
    %c13 = arith.constant 13 : index
    %c0_47 = arith.constant 0 : index
    %c0_48 = arith.constant 0 : index
    %76 = vector.load %arg4[%c13, %c0_47, %c0_48] : memref<16x32x64xbf16, #tpu.memory_space<vmem>>, vector<1x32x64xbf16>
    %77 = vector.shape_cast %76 : vector<1x32x64xbf16> to vector<32x64xbf16>
    %cst_49 = arith.constant dense<0.000000e+00> : vector<11x64xf32>
    %78 = tpu.matmul %75, %77, %cst_49 {dimension_numbers = #tpu.dot_dimension_numbers<[1], [0], [0], [1], [0, 0, 1, 1], [], []>} : vector<11x32xbf16>, vector<32x64xbf16>, vector<11x64xf32> -> vector<11x64xf32>
    %79 = vector.extract_strided_slice %8 {offsets = [37, 0], sizes = [11, 32], strides = [1, 1]} : vector<64x32xf32> to vector<11x32xf32>
    %80 = arith.truncf %79 : vector<11x32xf32> to vector<11x32xbf16>
    %c14 = arith.constant 14 : index
    %c0_50 = arith.constant 0 : index
    %c0_51 = arith.constant 0 : index
    %81 = vector.load %arg4[%c14, %c0_50, %c0_51] : memref<16x32x64xbf16, #tpu.memory_space<vmem>>, vector<1x32x64xbf16>
    %82 = vector.shape_cast %81 : vector<1x32x64xbf16> to vector<32x64xbf16>
    %cst_52 = arith.constant dense<0.000000e+00> : vector<11x64xf32>
    %83 = tpu.matmul %80, %82, %cst_52 {dimension_numbers = #tpu.dot_dimension_numbers<[1], [0], [0], [1], [0, 0, 1, 1], [], []>} : vector<11x32xbf16>, vector<32x64xbf16>, vector<11x64xf32> -> vector<11x64xf32>
    %84 = vector.extract_strided_slice %8 {offsets = [53, 0], sizes = [11, 32], strides = [1, 1]} : vector<64x32xf32> to vector<11x32xf32>
    %85 = arith.truncf %84 : vector<11x32xf32> to vector<11x32xbf16>
    %c15 = arith.constant 15 : index
    %c0_53 = arith.constant 0 : index
    %c0_54 = arith.constant 0 : index
    %86 = vector.load %arg4[%c15, %c0_53, %c0_54] : memref<16x32x64xbf16, #tpu.memory_space<vmem>>, vector<1x32x64xbf16>
    %87 = vector.shape_cast %86 : vector<1x32x64xbf16> to vector<32x64xbf16>
    %cst_55 = arith.constant dense<0.000000e+00> : vector<11x64xf32>
    %88 = tpu.matmul %85, %87, %cst_55 {dimension_numbers = #tpu.dot_dimension_numbers<[1], [0], [0], [1], [0, 0, 1, 1], [], []>} : vector<11x32xbf16>, vector<32x64xbf16>, vector<11x64xf32> -> vector<11x64xf32>
    %89 = arith.addf %13, %18 : vector<11x64xf32>
    %90 = arith.addf %23, %28 : vector<11x64xf32>
    %91 = arith.addf %33, %38 : vector<11x64xf32>
    %92 = arith.addf %43, %48 : vector<11x64xf32>
    %93 = arith.addf %53, %58 : vector<11x64xf32>
    %94 = arith.addf %63, %68 : vector<11x64xf32>
    %95 = arith.addf %73, %78 : vector<11x64xf32>
    %96 = arith.addf %83, %88 : vector<11x64xf32>
    %97 = arith.addf %89, %90 : vector<11x64xf32>
    %98 = arith.addf %91, %92 : vector<11x64xf32>
    %99 = arith.addf %93, %94 : vector<11x64xf32>
    %100 = arith.addf %95, %96 : vector<11x64xf32>
    %101 = arith.addf %97, %98 : vector<11x64xf32>
    %102 = arith.addf %99, %100 : vector<11x64xf32>
    %103 = arith.addf %101, %102 : vector<11x64xf32>
    %c0_56 = arith.constant 0 : index
    %c0_57 = arith.constant 0 : index
    %104 = vector.load %arg5[%c0_56, %c0_57] : memref<1x64xf32, #tpu.memory_space<vmem>>, vector<1x64xf32>
    %105 = vector.broadcast %104 : vector<1x64xf32> to vector<11x64xf32>
    %106 = arith.addf %103, %105 : vector<11x64xf32>
    %cst_58 = arith.constant 0.000000e+00 : f32
    %107 = vector.broadcast %cst_58 : f32 to vector<11x64xf32>
    %108 = arith.maximumf %106, %107 : vector<11x64xf32>
    %109 = vector.extract_strided_slice %108 {offsets = [0, 0], sizes = [1, 64], strides = [1, 1]} : vector<11x64xf32> to vector<1x64xf32>
    %110 = arith.truncf %109 : vector<1x64xf32> to vector<1x64xbf16>
    %c0_59 = arith.constant 0 : index
    %c0_60 = arith.constant 0 : index
    %c0_61 = arith.constant 0 : index
    %111 = vector.load %arg6[%c0_59, %c0_60, %c0_61] : memref<9x64x64xbf16, #tpu.memory_space<vmem>>, vector<1x64x64xbf16>
    %112 = vector.shape_cast %111 : vector<1x64x64xbf16> to vector<64x64xbf16>
    %cst_62 = arith.constant dense<0.000000e+00> : vector<1x64xf32>
    %113 = tpu.matmul %110, %112, %cst_62 {dimension_numbers = #tpu.dot_dimension_numbers<[1], [0], [0], [1], [0, 0, 1, 1], [], []>} : vector<1x64xbf16>, vector<64x64xbf16>, vector<1x64xf32> -> vector<1x64xf32>
    %114 = vector.extract_strided_slice %108 {offsets = [1, 0], sizes = [1, 64], strides = [1, 1]} : vector<11x64xf32> to vector<1x64xf32>
    %115 = arith.truncf %114 : vector<1x64xf32> to vector<1x64xbf16>
    %c1_63 = arith.constant 1 : index
    %c0_64 = arith.constant 0 : index
    %c0_65 = arith.constant 0 : index
    %116 = vector.load %arg6[%c1_63, %c0_64, %c0_65] : memref<9x64x64xbf16, #tpu.memory_space<vmem>>, vector<1x64x64xbf16>
    %117 = vector.shape_cast %116 : vector<1x64x64xbf16> to vector<64x64xbf16>
    %cst_66 = arith.constant dense<0.000000e+00> : vector<1x64xf32>
    %118 = tpu.matmul %115, %117, %cst_66 {dimension_numbers = #tpu.dot_dimension_numbers<[1], [0], [0], [1], [0, 0, 1, 1], [], []>} : vector<1x64xbf16>, vector<64x64xbf16>, vector<1x64xf32> -> vector<1x64xf32>
    %119 = vector.extract_strided_slice %108 {offsets = [2, 0], sizes = [1, 64], strides = [1, 1]} : vector<11x64xf32> to vector<1x64xf32>
    %120 = arith.truncf %119 : vector<1x64xf32> to vector<1x64xbf16>
    %c2_67 = arith.constant 2 : index
    %c0_68 = arith.constant 0 : index
    %c0_69 = arith.constant 0 : index
    %121 = vector.load %arg6[%c2_67, %c0_68, %c0_69] : memref<9x64x64xbf16, #tpu.memory_space<vmem>>, vector<1x64x64xbf16>
    %122 = vector.shape_cast %121 : vector<1x64x64xbf16> to vector<64x64xbf16>
    %cst_70 = arith.constant dense<0.000000e+00> : vector<1x64xf32>
    %123 = tpu.matmul %120, %122, %cst_70 {dimension_numbers = #tpu.dot_dimension_numbers<[1], [0], [0], [1], [0, 0, 1, 1], [], []>} : vector<1x64xbf16>, vector<64x64xbf16>, vector<1x64xf32> -> vector<1x64xf32>
    %124 = vector.extract_strided_slice %108 {offsets = [4, 0], sizes = [1, 64], strides = [1, 1]} : vector<11x64xf32> to vector<1x64xf32>
    %125 = arith.truncf %124 : vector<1x64xf32> to vector<1x64xbf16>
    %c3_71 = arith.constant 3 : index
    %c0_72 = arith.constant 0 : index
    %c0_73 = arith.constant 0 : index
    %126 = vector.load %arg6[%c3_71, %c0_72, %c0_73] : memref<9x64x64xbf16, #tpu.memory_space<vmem>>, vector<1x64x64xbf16>
    %127 = vector.shape_cast %126 : vector<1x64x64xbf16> to vector<64x64xbf16>
    %cst_74 = arith.constant dense<0.000000e+00> : vector<1x64xf32>
    %128 = tpu.matmul %125, %127, %cst_74 {dimension_numbers = #tpu.dot_dimension_numbers<[1], [0], [0], [1], [0, 0, 1, 1], [], []>} : vector<1x64xbf16>, vector<64x64xbf16>, vector<1x64xf32> -> vector<1x64xf32>
    %129 = vector.extract_strided_slice %108 {offsets = [5, 0], sizes = [1, 64], strides = [1, 1]} : vector<11x64xf32> to vector<1x64xf32>
    %130 = arith.truncf %129 : vector<1x64xf32> to vector<1x64xbf16>
    %c4_75 = arith.constant 4 : index
    %c0_76 = arith.constant 0 : index
    %c0_77 = arith.constant 0 : index
    %131 = vector.load %arg6[%c4_75, %c0_76, %c0_77] : memref<9x64x64xbf16, #tpu.memory_space<vmem>>, vector<1x64x64xbf16>
    %132 = vector.shape_cast %131 : vector<1x64x64xbf16> to vector<64x64xbf16>
    %cst_78 = arith.constant dense<0.000000e+00> : vector<1x64xf32>
    %133 = tpu.matmul %130, %132, %cst_78 {dimension_numbers = #tpu.dot_dimension_numbers<[1], [0], [0], [1], [0, 0, 1, 1], [], []>} : vector<1x64xbf16>, vector<64x64xbf16>, vector<1x64xf32> -> vector<1x64xf32>
    %134 = vector.extract_strided_slice %108 {offsets = [6, 0], sizes = [1, 64], strides = [1, 1]} : vector<11x64xf32> to vector<1x64xf32>
    %135 = arith.truncf %134 : vector<1x64xf32> to vector<1x64xbf16>
    %c5_79 = arith.constant 5 : index
    %c0_80 = arith.constant 0 : index
    %c0_81 = arith.constant 0 : index
    %136 = vector.load %arg6[%c5_79, %c0_80, %c0_81] : memref<9x64x64xbf16, #tpu.memory_space<vmem>>, vector<1x64x64xbf16>
    %137 = vector.shape_cast %136 : vector<1x64x64xbf16> to vector<64x64xbf16>
    %cst_82 = arith.constant dense<0.000000e+00> : vector<1x64xf32>
    %138 = tpu.matmul %135, %137, %cst_82 {dimension_numbers = #tpu.dot_dimension_numbers<[1], [0], [0], [1], [0, 0, 1, 1], [], []>} : vector<1x64xbf16>, vector<64x64xbf16>, vector<1x64xf32> -> vector<1x64xf32>
    %139 = vector.extract_strided_slice %108 {offsets = [8, 0], sizes = [1, 64], strides = [1, 1]} : vector<11x64xf32> to vector<1x64xf32>
    %140 = arith.truncf %139 : vector<1x64xf32> to vector<1x64xbf16>
    %c6_83 = arith.constant 6 : index
    %c0_84 = arith.constant 0 : index
    %c0_85 = arith.constant 0 : index
    %141 = vector.load %arg6[%c6_83, %c0_84, %c0_85] : memref<9x64x64xbf16, #tpu.memory_space<vmem>>, vector<1x64x64xbf16>
    %142 = vector.shape_cast %141 : vector<1x64x64xbf16> to vector<64x64xbf16>
    %cst_86 = arith.constant dense<0.000000e+00> : vector<1x64xf32>
    %143 = tpu.matmul %140, %142, %cst_86 {dimension_numbers = #tpu.dot_dimension_numbers<[1], [0], [0], [1], [0, 0, 1, 1], [], []>} : vector<1x64xbf16>, vector<64x64xbf16>, vector<1x64xf32> -> vector<1x64xf32>
    %144 = vector.extract_strided_slice %108 {offsets = [9, 0], sizes = [1, 64], strides = [1, 1]} : vector<11x64xf32> to vector<1x64xf32>
    %145 = arith.truncf %144 : vector<1x64xf32> to vector<1x64xbf16>
    %c7_87 = arith.constant 7 : index
    %c0_88 = arith.constant 0 : index
    %c0_89 = arith.constant 0 : index
    %146 = vector.load %arg6[%c7_87, %c0_88, %c0_89] : memref<9x64x64xbf16, #tpu.memory_space<vmem>>, vector<1x64x64xbf16>
    %147 = vector.shape_cast %146 : vector<1x64x64xbf16> to vector<64x64xbf16>
    %cst_90 = arith.constant dense<0.000000e+00> : vector<1x64xf32>
    %148 = tpu.matmul %145, %147, %cst_90 {dimension_numbers = #tpu.dot_dimension_numbers<[1], [0], [0], [1], [0, 0, 1, 1], [], []>} : vector<1x64xbf16>, vector<64x64xbf16>, vector<1x64xf32> -> vector<1x64xf32>
    %149 = vector.extract_strided_slice %108 {offsets = [10, 0], sizes = [1, 64], strides = [1, 1]} : vector<11x64xf32> to vector<1x64xf32>
    %150 = arith.truncf %149 : vector<1x64xf32> to vector<1x64xbf16>
    %c8_91 = arith.constant 8 : index
    %c0_92 = arith.constant 0 : index
    %c0_93 = arith.constant 0 : index
    %151 = vector.load %arg6[%c8_91, %c0_92, %c0_93] : memref<9x64x64xbf16, #tpu.memory_space<vmem>>, vector<1x64x64xbf16>
    %152 = vector.shape_cast %151 : vector<1x64x64xbf16> to vector<64x64xbf16>
    %cst_94 = arith.constant dense<0.000000e+00> : vector<1x64xf32>
    %153 = tpu.matmul %150, %152, %cst_94 {dimension_numbers = #tpu.dot_dimension_numbers<[1], [0], [0], [1], [0, 0, 1, 1], [], []>} : vector<1x64xbf16>, vector<64x64xbf16>, vector<1x64xf32> -> vector<1x64xf32>
    %154 = arith.addf %113, %118 : vector<1x64xf32>
    %155 = arith.addf %123, %128 : vector<1x64xf32>
    %156 = arith.addf %133, %138 : vector<1x64xf32>
    %157 = arith.addf %143, %148 : vector<1x64xf32>
    %158 = arith.addf %154, %155 : vector<1x64xf32>
    %159 = arith.addf %156, %157 : vector<1x64xf32>
    %160 = arith.addf %158, %159 : vector<1x64xf32>
    %161 = arith.addf %160, %153 : vector<1x64xf32>
    %c0_95 = arith.constant 0 : index
    %c0_96 = arith.constant 0 : index
    %162 = vector.load %arg7[%c0_95, %c0_96] : memref<1x64xf32, #tpu.memory_space<vmem>>, vector<1x64xf32>
    %163 = arith.addf %161, %162 : vector<1x64xf32>
    %cst_97 = arith.constant 0.000000e+00 : f32
    %164 = vector.broadcast %cst_97 : f32 to vector<1x64xf32>
    %165 = arith.maximumf %163, %164 : vector<1x64xf32>
    %166 = arith.truncf %165 : vector<1x64xf32> to vector<1x64xbf16>
    %c0_98 = arith.constant 0 : index
    %c0_99 = arith.constant 0 : index
    %167 = vector.load %arg8[%c0_98, %c0_99] : memref<64x512xbf16, #tpu.memory_space<vmem>>, vector<64x512xbf16>
    %cst_100 = arith.constant dense<0.000000e+00> : vector<1x512xf32>
    %168 = tpu.matmul %166, %167, %cst_100 {dimension_numbers = #tpu.dot_dimension_numbers<[1], [0], [0], [1], [0, 0, 1, 1], [], []>} : vector<1x64xbf16>, vector<64x512xbf16>, vector<1x512xf32> -> vector<1x512xf32>
    %c0_101 = arith.constant 0 : index
    %c0_102 = arith.constant 0 : index
    %169 = vector.load %arg9[%c0_101, %c0_102] : memref<1x512xf32, #tpu.memory_space<vmem>>, vector<1x512xf32>
    %170 = arith.addf %168, %169 : vector<1x512xf32>
    %cst_103 = arith.constant 0.000000e+00 : f32
    %171 = vector.broadcast %cst_103 : f32 to vector<1x512xf32>
    %172 = arith.maximumf %170, %171 : vector<1x512xf32>
    %173 = arith.truncf %172 : vector<1x512xf32> to vector<1x512xbf16>
    %c0_104 = arith.constant 0 : index
    %c0_105 = arith.constant 0 : index
    %174 = vector.load %arg10[%c0_104, %c0_105] : memref<512x128xbf16, #tpu.memory_space<vmem>>, vector<512x128xbf16>
    %cst_106 = arith.constant dense<0.000000e+00> : vector<1x128xf32>
    %175 = tpu.matmul %173, %174, %cst_106 {dimension_numbers = #tpu.dot_dimension_numbers<[1], [0], [0], [1], [0, 0, 1, 1], [], []>} : vector<1x512xbf16>, vector<512x128xbf16>, vector<1x128xf32> -> vector<1x128xf32>
    %c0_107 = arith.constant 0 : index
    %c0_108 = arith.constant 0 : index
    %176 = vector.load %arg11[%c0_107, %c0_108] : memref<1x128xf32, #tpu.memory_space<vmem>>, vector<1x128xf32>
    %177 = arith.addf %175, %176 : vector<1x128xf32>
    %c0_109 = arith.constant 0 : index
    %c0_110 = arith.constant 0 : index
    %c0_111 = arith.constant 0 : index
    %178 = vector.load %arg12[%c0_109, %c0_110, %c0_111] : memref<1x1x128xf32, #tpu.memory_space<vmem>>, vector<1x1x128xf32>
    %179 = vector.shape_cast %178 : vector<1x1x128xf32> to vector<1x128xf32>
    %180 = vector.shape_cast %177 : vector<1x128xf32> to vector<1x1x128xf32>
    tpu.vector_store %arg12[%c0_109, %c0_110, %c0_111], %180 {strides = array<i32>} : memref<1x1x128xf32, #tpu.memory_space<vmem>>, vector<1x1x128xf32>,
    return
  }
  func.func @transform_0(%arg0: i32) -> (i32, i32, i32) {
    %c0_i32 = arith.constant 0 : i32
    %c0_i32_0 = arith.constant 0 : i32
    %c0_i32_1 = arith.constant 0 : i32
    return %arg0, %c0_i32, %c0_i32_0 : i32, i32, i32
  }
  func.func @transform_1(%arg0: i32) -> (i32, i32) {
    %c0_i32 = arith.constant 0 : i32
    %c0_i32_0 = arith.constant 0 : i32
    %c0_i32_1 = arith.constant 0 : i32
    return %c0_i32, %c0_i32_0 : i32, i32
  }
  func.func @transform_2(%arg0: i32) -> (i32, i32) {
    %c0_i32 = arith.constant 0 : i32
    %c0_i32_0 = arith.constant 0 : i32
    %c0_i32_1 = arith.constant 0 : i32
    return %c0_i32, %c0_i32_0 : i32, i32
  }
  func.func @transform_3(%arg0: i32) -> (i32, i32, i32) {
    %c0_i32 = arith.constant 0 : i32
    %c0_i32_0 = arith.constant 0 : i32
    %c0_i32_1 = arith.constant 0 : i32
    %c0_i32_2 = arith.constant 0 : i32
    return %c0_i32, %c0_i32_0, %c0_i32_1 : i32, i32, i32
  }
  func.func @transform_4(%arg0: i32) -> (i32, i32) {
    %c0_i32 = arith.constant 0 : i32
    %c0_i32_0 = arith.constant 0 : i32
    %c0_i32_1 = arith.constant 0 : i32
    return %c0_i32, %c0_i32_0 : i32, i32
  }
  func.func @transform_5(%arg0: i32) -> (i32, i32, i32) {
    %c0_i32 = arith.constant 0 : i32
    %c0_i32_0 = arith.constant 0 : i32
    %c0_i32_1 = arith.constant 0 : i32
    %c0_i32_2 = arith.constant 0 : i32
    return %c0_i32, %c0_i32_0, %c0_i32_1 : i32, i32, i32
  }
  func.func @transform_6(%arg0: i32) -> (i32, i32) {
    %c0_i32 = arith.constant 0 : i32
    %c0_i32_0 = arith.constant 0 : i32
    %c0_i32_1 = arith.constant 0 : i32
    return %c0_i32, %c0_i32_0 : i32, i32
  }
  func.func @transform_7(%arg0: i32) -> (i32, i32) {
    %c0_i32 = arith.constant 0 : i32
    %c0_i32_0 = arith.constant 0 : i32
    %c0_i32_1 = arith.constant 0 : i32
    return %c0_i32, %c0_i32_0 : i32, i32
  }
  func.func @transform_8(%arg0: i32) -> (i32, i32) {
    %c0_i32 = arith.constant 0 : i32
    %c0_i32_0 = arith.constant 0 : i32
    %c0_i32_1 = arith.constant 0 : i32
    return %c0_i32, %c0_i32_0 : i32, i32
  }
  func.func @transform_9(%arg0: i32) -> (i32, i32) {
    %c0_i32 = arith.constant 0 : i32
    %c0_i32_0 = arith.constant 0 : i32
    %c0_i32_1 = arith.constant 0 : i32
    return %c0_i32, %c0_i32_0 : i32, i32
  }
  func.func @transform_10(%arg0: i32) -> (i32, i32) {
    %c0_i32 = arith.constant 0 : i32
    %c0_i32_0 = arith.constant 0 : i32
    %c0_i32_1 = arith.constant 0 : i32
    return %c0_i32, %c0_i32_0 : i32, i32
  }
  func.func @transform_11(%arg0: i32) -> (i32, i32, i32) {
    %c0_i32 = arith.constant 0 : i32
    %c0_i32_0 = arith.constant 0 : i32
    %c0_i32_1 = arith.constant 0 : i32
    return %arg0, %c0_i32, %c0_i32_0 : i32, i32, i32
  }
}

</mosaic_0001>

<bundles_post_ra>
// kernel: cnn_dqn_forward.1
= control target key start
LH: loop header
LB: loop body
LE: loop exit
PB: predicated region body
PF: predicated region fallthrough
CT: control target
= control target key end

     0   :  { %16 = vsyncpa [#allocation3], 0  ;;  %s4764_s0 = inlined_call_operand.vmem [shape: bf16[2,64,256], index: 0, kind: input, shape index: {}]   ;;  %s4765_s1 = inlined_call_operand.vmem [shape: bf16[256,32], index: 1, kind: input, shape index: {}]   ;;  %s4766_s2 = inlined_call_operand.vmem [shape: f32[1,32], index: 2, kind: input, shape index: {}]   ;;  %s4767_s3 = inlined_call_operand.vmem [shape: bf16[16,32,64], index: 3, kind: input, shape index: {}]   ;;  %s4768_s4 = inlined_call_operand.vmem [shape: f32[1,64], index: 4, kind: input, shape index: {}]   ;;  %s4769_s5 = inlined_call_operand.vmem [shape: bf16[9,64,64], index: 5, kind: input, shape index: {}]   ;;  %s4770_s6 = inlined_call_operand.vmem [shape: f32[1,64], index: 6, kind: input, shape index: {}]   ;;  %s4771_s7 = inlined_call_operand.vmem [shape: bf16[64,512], index: 7, kind: input, shape index: {}]   ;;  %s4772_s8 = inlined_call_operand.vmem [shape: f32[1,512], index: 8, kind: input, shape index: {}]   ;;  %s4773_s9 = inlined_call_operand.vmem [shape: bf16[512,128], index: 9, kind: input, shape index: {}]   ;;  %s4774_s10 = inlined_call_operand.vmem [shape: f32[1,128], index: 10, kind: input, shape index: {}]   ;;  %s4775_s11 = inlined_call_operand.hbm [shape: f32[2,1,128], index: 11, kind: output, shape index: {}]  }
   0x1   :  { %18 = vsyncpa [#allocation3 + $0x1], 0  ;;  %s4050_s17 = smov 0   ;;  %s4052_s18 = smov 0  }
   0x2   :  { %s4054_s19 = smov 0   ;;  %s4056_s20 = smov 0  }
   0x3 LB: > { %s4071_s21 = sadd.s32 4294967295, %s3984_s20   ;;  %s3012_s22 = sadd.s32 4294967294, %s3984_s20   ;;  %s3984_s20 = sphi %s4056_s20, %s4783_s20   ;;  %s3980_s19 = sphi %s4054_s19, %s4782_s19   ;;  %s3976_s18 = sphi %s4052_s18, %s4781_s18   ;;  %s3972_s17 = sphi %s4050_s17, %s4780_s17  }
   0x4   : > { %s4075_s23 = sadd.s32 1, %s3984_s20   ;;  %s267_s24 = sadd.s32 1, %s3980_s19 }
   0x5   : > { %s264_s25 = ssub.s32 %s3984_s20, %s4075_s23  ;;  %p277_p0 = scmp.ne.s32.totalorder %s3980_s19, %s3976_s18 }
   0x6   : > { %p265_p1 = scmp.eq.s32.totalorder %s264_s25, 0  ;;  %p278_p2 = scmp.eq.s32.totalorder %s4071_s21, 1 }
   0x7   : > { %p283_p3 = scmp.ne.s32.totalorder %s3976_s18, %s3972_s17  ;;  %p284_p4 = scmp.eq.s32.totalorder %s3012_s22, 1 }
   0x8   : > { %s4086_s26 = scalar_select %p265_p1, %s3980_s19, %s267_s24  }
   0x9   : > { %p4088_p5 = por %p278_p2, %p277_p0  ;;  %p4092_p6 = por %p284_p4, %p283_p3 }
   0xa   : > { %4776 = sst [smem:[#allocation5_spill]] %s4086_s26  ;;  %p3015_p7 = scmp.ge.s32.totalorder %s3984_s20, 1 }
   0xb   : > { %p340_p8 = scmp.lt.s32.totalorder %s3984_s20, 3 }
   0xd   : > { %p341_p9 = pnand %p3015_p7, %p340_p8 }
   0xe   : > { %v3770_v0 = vld [vmem:[%s4765_s1 + $0x40] sm:$0xff] (!%p341_p9)   ;;  %v3772_v2 = vld [vmem:[%s4765_s1 + $0x48] sm:$0xff] (!%p341_p9)   ;;  %p379_p10 = scmp.lt.s32.totalorder (!%p341_p9), %s4071_s21, 1  ;;  %v3774_v4 = vld [vmem:[%s4765_s1 + $0x50] sm:$0xff] (!%p341_p9)   ;;  %v3986_v25 = vmov (!%p341_p9), 0.0   ;;  %vm3987_vm0 = vmmov (!%p341_p9), 0  }
   0xf   : > { %344 = sbr.rel (%p341_p9) target bundleno = 1329 (0x531), region = 64  ;;  %v3771_v1 = vld [vmem:[%s4765_s1] sm:$0xff] (!%p341_p9)   ;;  %3315 = vmatprep.subr.bf16.mxu0 (!%p341_p9), %v3770_v0  ;;  %v3773_v3 = vld [vmem:[%s4765_s1 + $0x8] sm:$0xff] (!%p341_p9)   ;;  %v3775_v5 = vld [vmem:[%s4765_s1 + $0x10] sm:$0xff] (!%p341_p9)   ;;  %3492 = vmatprep.subr.bf16.mxu1 (!%p341_p9), %v3986_v25  ;;  %vm664_vm1 = vcmask (!%p341_p9), 261120   ;;  %vm1735_vm2 = vcmask (!%p341_p9), 523264  }
  0x10   : > { %3316 = vmatpush3.bf16.msra.mxu0 (!%p341_p9), %v3771_v1  ;;  %v3776_v6 = vld [vmem:[%s4765_s1 + $0x58] sm:$0xff] (!%p341_p9)   ;;  %v3778_v8 = vld [vmem:[%s4765_s1 + $0x60] sm:$0xff] (!%p341_p9)   ;;  %v3780_v10 = vld [vmem:[%s4765_s1 + $0x68] sm:$0xff] (!%p341_p9)   ;;  %3496 = vmatprep.mubr.msk.bf16.mxu1 (!%p341_p9), %vm3987_vm0, %v3986_v25  ;;  %s377_s15 = sand.u32 (!%p341_p9), 1, %s3976_s18   ;;  %s3311_s24 = sshll.u32 (!%p341_p9), %s4071_s21, 4 }
  0x11   : > { %3317 = vmatprep.subr.bf16.mxu0 (!%p341_p9), %v3772_v2  ;;  %v3777_v7 = vld [vmem:[%s4765_s1 + $0x18] sm:$0xff] (!%p341_p9)   ;;  %v3779_v9 = vld [vmem:[%s4765_s1 + $0x20] sm:$0xff] (!%p341_p9)   ;;  %v3781_v12 = vld [vmem:[%s4765_s1 + $0x28] sm:$0xff] (!%p341_p9)   ;;  %s378_s26 = scalar_lea.vmem (!%p341_p9), [#allocation2], %s377_s15  ;;  %s4722_s29 = scalar_lea.hbm (!%p341_p9), %s4775_s11, %s3311_s24 }
  0x12   : > { %v3782_v13 = vld [vmem:[%s4765_s1 + $0x70] sm:$0xff] (!%p341_p9)   ;;  %v3784_v15 = vld [vmem:[%s4765_s1 + $0x78] sm:$0xff] (!%p341_p9)   ;;  %v3018_v30 = vld [vmem:[%s4766_s2] ss:$0 sm:$0xff] (!%p341_p9)  ;;  %s2945_s13 = scalar_lea.sflag (!%p341_p9), [#allocation3], %s377_s15 }
  0x13   : > { %v3783_v14 = vld [vmem:[%s4765_s1 + $0x30] sm:$0xff] (!%p341_p9)   ;;  %v3785_v16 = vld [vmem:[%s4765_s1 + $0x38] sm:$0xff] (!%p341_p9)  }
  0x14   : > { %3318 = vmatpush3.bf16.msra.mxu0 (!%p341_p9), %v3773_v3  ;;  %v3798_v24 = vld [vmem:[%s4767_s3 + $0x10] sm:$0xff] (!%p341_p9)   ;;  %v3799_v26 = vld [vmem:[%s4767_s3 + $0x18] sm:$0xff] (!%p341_p9)  }
  0x15   : > { %3319 = vmatprep.subr.bf16.mxu0 (!%p341_p9), %v3774_v4  ;;  %3493 = vmatpush3.bf16.msra.mxu1 (!%p341_p9), %v3798_v24  ;;  %v3804_v27 = vld [vmem:[%s4767_s3 + $0xf0] sm:$0xff] (!%p341_p9)   ;;  %v3806_v28 = vld [vmem:[%s4767_s3 + $0xf8] sm:$0xff] (!%p341_p9)  }
  0x16   : > { %s380_s12 = scalar_select %p379_p10, %s4071_s21, 1  ;;  %3494 = vmatprep.subr.bf16.mxu1 %v3986_v25  ;;  %v3800_v53 = vld [vmem:[%s4767_s3 + $0x30] sm:$0xff]   ;;  %v3801_v61 = vld [vmem:[%s4767_s3 + $0x38] sm:$0xff]  }
  0x17   : > { %s3989_s21 = smov [#allocation2]  }
  0x18   : > { %3320 = vmatpush3.bf16.msra.mxu0 %v3775_v5  ;;  %s3314_s22 = sshll.u32 %s380_s12, 6  ;;  %v3802_v5 = vld [vmem:[%s4767_s3 + $0x50] sm:$0xff]   ;;  %s3926_s12 = sshll.u32 %s3989_s21, 4  ;;  %s3927_s12 = int_to_ptr.vmem [resolvable:$false] %s3926_s12 }
  0x19   : > { %3321 = vmatprep.subr.bf16.mxu0 %v3776_v6  ;;  %s4130_s30 = scalar_lea.vmem %s4764_s0, %s3314_s22  ;;  %3495 = vmatpush3.bf16.msra.mxu1 %v3799_v26  ;;  %v3808_v26 = vld [vmem:[%s4767_s3 + $0x20] sm:$0xff]   ;;  %s2957_s22 = sshll.u32 %s378_s26, 4  ;;  %s4724_s22 = int_to_ptr.vmem [resolvable:$true] %s2957_s22 }
  0x1a   : > { %v3788_v11 = vld [vmem:[%s4130_s30 + $0x4] ss:$8 sps:$4 sm:$0xff]   ;;  %v3786_v17 = vld [vmem:[%s4130_s30] ss:$8 sps:$4 sm:$0xff]   ;;  %v3789_v18 = vld [vmem:[%s4130_s30 + $0x14] ss:$8 sps:$4 sm:$0xff]   ;;  %3500 = vmatprep.subr.bf16.mxu1 %v3986_v25  ;;  %p3929_p0 = scmp.lt.s32.totalorder %s4724_s22, %s3927_s12 }
  0x1b   : > { %600 = vmatprep.mubr.bf16.mxu0 %v3788_v11  ;;  %v3791_v19 = vld [vmem:[%s4130_s30 + $0x10] ss:$8 sps:$4 sm:$0xff]   ;;  %v3792_v20 = vld [vmem:[%s4130_s30 + $0x24] ss:$8 sps:$4 sm:$0xff]   ;;  %v3794_v21 = vld [vmem:[%s4130_s30 + $0x20] ss:$8 sps:$4 sm:$0xff]  }
  0x1c   : > { %3322 = vmatpush3.bf16.msra.mxu0 %v3777_v7  ;;  %v3795_v22 = vld [vmem:[%s4130_s30 + $0x34] ss:$8 sps:$4 sm:$0xff]   ;;  %v3797_v23 = vld [vmem:[%s4130_s30 + $0x30] ss:$8 sps:$4 sm:$0xff]   ;;  %s3922_s14 = scalar_lea.vmem %s4724_s22, 16  ;;  %s3928_s16 = scalar_lea.vmem %s3927_s12, 32 }
  0x1d   : > { %3323 = vmatprep.subr.bf16.mxu0 %v3778_v8  ;;  %p3923_p11 = scmp.ne.s32.totalorder %s4724_s22, %s3922_s14  ;;  %p3930_p1 = scmp.lt.s32.totalorder %s3928_s16, %s3922_s14 }
  0x1f   : > { %p3924_p12 = pnand %p3923_p11, %p4088_p5  ;;  %p3931_p2 = por %p3930_p1, %p3929_p0 }
  0x20   : > { %3324 = vmatpush3.bf16.msra.mxu0 %v3779_v9 }
  0x21   : > { %3325 = vmatprep.subr.bf16.mxu0 %v3780_v10  ;;  %p3925_p13 = pneg %p3924_p12 }
  0x23   : > { %p3932_p3 = pnand %p3931_p2, %p3925_p13 }
  0x24   : > { %3326 = vmatpush3.bf16.msra.mxu0 %v3781_v12 }
  0x25   : > { %3327 = vmatprep.subr.bf16.mxu0 %v3782_v13  ;;  %v3803_v13 = vld [vmem:[%s4767_s3 + $0x58] sm:$0xff]  }
  0x28   : > { %3328 = vmatpush3.bf16.msra.mxu0 %v3783_v14 }
  0x29   : > { %3329 = vmatprep.subr.bf16.mxu0 %v3784_v15 }
  0x2c   : > { %3330 = vmatpush3.bf16.msra.mxu0 %v3785_v16 }
  0x2d   : > { %3548 = vmatprep.subr.bf16.mxu0 %v3986_v25 }
  0x2f   : > { %601 = vmatmul.mubr.bf16.vlgmr.msra.gmra.mrb[0].mxu0 %v3786_v17  ;;  %v3805_v17 = vld [vmem:[%s4767_s3 + $0x70] sm:$0xff]  }
  0x30   : > { %608 = vmatprep.mubr.bf16.mxu0 %v3789_v18  ;;  %3549 = vmatpush3.bf16.msra.mxu0 %v3804_v27 }
  0x31   : > { %3550 = vmatprep.subr.bf16.mxu0 %v3986_v25 }
  0x34   : > { %3551 = vmatpush3.bf16.msra.mxu0 %v3806_v28 }
  0x35   : > { %3564 = vmatprep.subr.bf16.mxu0 %v3986_v25 }
  0x37   : > { %609 = vmatmul.mubr.bf16.gmra.mrb[4].mxu0 %v3791_v19 }
  0x38   : > { %616 = vmatprep.mubr.bf16.mxu0 %v3792_v20 }
  0x3f   : > { %617 = vmatmul.mubr.bf16.gmra.mrb[8].mxu0 %v3794_v21  ;;  %v3807_v21 = vld [vmem:[%s4767_s3 + $0x78] sm:$0xff]  }
  0x40   : > { %624 = vmatprep.mubr.bf16.mxu0 %v3795_v22 }
  0x47   : > { %625 = vmatmul.mubr.bf16.gmra.mrb[12].mxu0 %v3797_v23 }
  0x48   : > { %3552 = vmatprep.mubr.msk.bf16.mxu0 %vm3987_vm0, %v3986_v25 }
 0x102   : > { %v3331_v29 = vpop.f32.mrb[0].mxu0 }
 0x103   : > { %v3332_v31 = vpop.f32.mrb[1].mxu0 }
 0x104   : > { %v3333_v32 = vadd.f32 %v3332_v31, %v3331_v29  ;;  %v3334_v33 = vpop.f32.mrb[2].mxu0  ;;  %v3809_v29 = vld [vmem:[%s4767_s3 + $0x90] sm:$0xff]   ;;  %v3810_v31 = vld [vmem:[%s4767_s3 + $0x28] sm:$0xff]  }
 0x105   : > { %v3335_v34 = vpop.f32.mrb[3].mxu0 }
 0x106   : > { %v603_v35 = vadd.f32 %v3333_v32, %v3018_v30  ;;  %v3336_v36 = vadd.f32 %v3335_v34, %v3334_v33  ;;  %v3811_v33 = vld [vmem:[%s4767_s3 + $0x98] sm:$0xff]  }
 0x108   : > { %v606_v37 = vadd.f32 %v3336_v36, %v3018_v30  ;;  %v633_v38 = vmax.f32 %v603_v35, 0.0  ;;  %v3812_v35 = vld [vmem:[%s4767_s3 + $0x60] sm:$0xff]  }
 0x10a   : > { %v634_v39 = vmax.f32 %v606_v37, 0.0  ;;  %v3337_v40 = vpop.f32.mrb[4].mxu0 }
 0x10b   : > { %v3338_v41 = vpop.f32.mrb[5].mxu0 }
 0x10c   : > { %v4186_v42 = vpack.c.bf16 %v634_v39, %v633_v38  ;;  %v3339_v43 = vadd.f32 %v3338_v41, %v3337_v40  ;;  %v3340_v44 = vpop.f32.mrb[6].mxu0  ;;  %v3813_v38 = vld [vmem:[%s4767_s3 + $0xb0] sm:$0xff]   ;;  %v3814_v40 = vld [vmem:[%s4767_s3 + $0x68] sm:$0xff]  }
 0x10d   : > { %v3341_v45 = vpop.f32.mrb[7].mxu0 }
 0x10e   : > { %v611_v46 = vadd.f32 %v3339_v43, %v3018_v30  ;;  %v3342_v47 = vadd.f32 %v3341_v45, %v3340_v44  ;;  %v1253_v27 = vshll.u32 %v4186_v42, 16  ;;  %v1251_v34 = vshrl.u32 %v4186_v42, 16  ;;  %v3815_v43 = vld [vmem:[%s4767_s3 + $0xb8] sm:$0xff]  }
 0x110   : > { %v614_v48 = vadd.f32 %v3342_v47, %v3018_v30  ;;  %v635_v49 = vmax.f32 %v611_v46, 0.0  ;;  %v1255_v32 = vrot.slane %v1253_v27, 1  ;;  %v3816_v47 = vld [vmem:[%s4767_s3 + $0xa0] sm:$0xff]  }
 0x112   : > { %v636_v50 = vmax.f32 %v614_v48, 0.0  ;;  %v3343_v51 = vpop.f32.mrb[8].mxu0  ;;  %v1256_v37 = vor.u32 %v1255_v32, %v1251_v34 }
 0x113   : > { %v3344_v52 = vpop.f32.mrb[9].mxu0 }
 0x114   : > { %v4191_v54 = vpack.c.bf16 %v636_v50, %v635_v49  ;;  %v3345_v55 = vadd.f32 %v3344_v52, %v3343_v51  ;;  %v3346_v56 = vpop.f32.mrb[10].mxu0  ;;  %v3817_v49 = vld [vmem:[%s4767_s3 + $0xd0] sm:$0xff]   ;;  %v3818_v51 = vld [vmem:[%s4767_s3 + $0xa8] sm:$0xff]   ;;  %v1489_v52 = vrot.slane %v1251_v34, 2 }
 0x115   : > { %v3347_v57 = vpop.f32.mrb[11].mxu0 }
 0x116   : > { %v721_v58 = vshll.u32 %v4191_v54, 16  ;;  %v619_v59 = vadd.f32 %v3345_v55, %v3018_v30  ;;  %v3348_v60 = vadd.f32 %v3347_v57, %v3346_v56  ;;  %3497 = vmatmul.mubr.msk.bf16.vlgmr.msra.gmra.mrb[0].mxu1 %vm664_vm1, %v4191_v54  ;;  %v719_v0 = vshrl.u32 %v4191_v54, 16  ;;  %v3820_v55 = vld [vmem:[%s4767_s3 + $0xe0] sm:$0xff]  }
 0x117   : > { %3501 = vmatpush3.bf16.msra.mxu1 %v3800_v53  ;;  %3504 = vmatprep.mubr.msk.bf16.mxu1 %vm3987_vm0, %v3986_v25  ;;  %v932_v39 = vrot.slane %v4191_v54, 2  ;;  %v1490_v53 = vrot.slane %v1253_v27, 3  ;;  %v3819_v54 = vld [vmem:[%s4767_s3 + $0xd8] sm:$0xff]   ;;  %v3821_v57 = vld [vmem:[%s4767_s3] sm:$0xff]  }
 0x118   : > { %v622_v62 = vadd.f32 %v3348_v60, %v3018_v30  ;;  %3502 = vmatprep.subr.bf16.mxu1 %v3986_v25  ;;  %v723_v63 = vrot.slane %v721_v58, 1  ;;  %v637_v1 = vmax.f32 %v619_v59, 0.0  ;;  %v999_v45 = vrot.slane %v719_v0, 2  ;;  %v3822_v59 = vld [vmem:[%s4767_s3 + $0xe8] sm:$0xff]  }
 0x119   : > { %v1000_v46 = vrot.slane %v721_v58, 3  ;;  %v1491_v56 = vor.u32 %v1490_v53, %v1489_v52 }
 0x11a   : > { %v638_v2 = vmax.f32 %v622_v62, 0.0  ;;  %v3349_v3 = vpop.f32.mrb[12].mxu0  ;;  %v724_v9 = vor.u32 %v723_v63, %v719_v0  ;;  %v3823_v62 = vld [vmem:[%s4767_s3 + $0x8] sm:$0xff]   ;;  %v3824_v0 = vld [vmem:[%s4767_s3 + $0x40] sm:$0xff]  }
 0x11b   : > { %3503 = vmatpush3.bf16.msra.mxu1 %v3801_v61  ;;  %v3350_v4 = vpop.f32.mrb[13].mxu0  ;;  %v1001_v50 = vor.u32 %v1000_v46, %v999_v45 }
 0x11c   : > { %v4208_v6 = vpack.c.bf16 %v638_v2, %v637_v1  ;;  %v3351_v7 = vadd.f32 %v3350_v4, %v3349_v3  ;;  %v3352_v8 = vpop.f32.mrb[14].mxu0  ;;  %3508 = vmatprep.subr.bf16.mxu1 %v3986_v25  ;;  %v3825_v1 = vld [vmem:[%s4767_s3 + $0x48] sm:$0xff]   ;;  %v3826_v2 = vld [vmem:[%s4767_s3 + $0x80] sm:$0xff]  }
 0x11d   : > { %v3353_v10 = vpop.f32.mrb[15].mxu0  ;;  %v3827_v3 = vld [vmem:[%s4767_s3 + $0x88] sm:$0xff]   ;;  %v3828_v4 = vld [vmem:[%s4767_s3 + $0xc0] sm:$0xff]  }
 0x11e   : > { %v627_v11 = vadd.f32 %v3351_v7, %v3018_v30  ;;  %v3354_v12 = vadd.f32 %v3353_v10, %v3352_v8  ;;  %3505 = vmatmul.mubr.msk.bf16.vlgmr.msra.gmra.mrb[4].mxu1 %vm664_vm1, %v724_v9  ;;  %v1371_v36 = vshll.u32 %v4208_v6, 16  ;;  %v1369_v44 = vshrl.u32 %v4208_v6, 16  ;;  %v3829_v7 = vld [vmem:[%s4767_s3 + $0xc8] sm:$0xff]   ;;  %v3831_v9 = vld [vmem:[%s4769_s5 + $0x60] sm:$0xff]  }
 0x11f   : > { %3509 = vmatpush3.bf16.msra.mxu1 %v3802_v5  ;;  %3512 = vmatprep.mubr.msk.bf16.mxu1 %vm3987_vm0, %v3986_v25  ;;  %v1432_v5 = vrot.slane %v4186_v42, 2  ;;  %v1549_v8 = vrot.slane %v4208_v6, 2  ;;  %v3833_v10 = vld [vmem:[%s4769_s5 + $0x68] sm:$0xff]  }
 0x120   : > { %v630_v14 = vadd.f32 %v3354_v12, %v3018_v30  ;;  %3510 = vmatprep.subr.bf16.mxu1 %v3986_v25  ;;  %v639_v15 = vmax.f32 %v627_v11, 0.0  ;;  %v1373_v41 = vrot.slane %v1371_v36, 1  ;;  %v1606_v60 = vrot.slane %v1369_v44, 2  ;;  %v3834_v11 = vld [vmem:[%s4769_s5 + $0x30] sm:$0xff]  }
 0x121   : > { %v1607_v61 = vrot.slane %v1371_v36, 3  ;;  %v3835_v12 = vld [vmem:[%s4769_s5 + $0x70] sm:$0xff]  }
 0x122   : > { %v640_v16 = vmax.f32 %v630_v14, 0.0  ;;  %v1374_v48 = vor.u32 %v1373_v41, %v1369_v44  ;;  %v3837_v14 = vld [vmem:[%s4769_s5 + $0x78] sm:$0xff]  }
 0x123   : > { %3511 = vmatpush3.bf16.msra.mxu1 %v3803_v13  ;;  %v1608_v63 = vor.u32 %v1607_v61, %v1606_v60  ;;  %v3836_v13 = vld [vmem:[%s4769_s5 + $0x38] sm:$0xff]  }
 0x124   : > { %v4223_v18 = vpack.c.bf16 %v640_v16, %v639_v15  ;;  %3516 = vmatprep.subr.bf16.mxu1 %v3986_v25 }
 0x126   : > { %v859_v19 = vshrl.u32 %v4223_v18, 16  ;;  %v861_v20 = vshll.u32 %v4223_v18, 16  ;;  %3513 = vmatmul.mubr.msk.bf16.vlgmr.msra.gmra.mrb[8].mxu1 %vm664_vm1, %v4223_v18  ;;  %v1069_v58 = vrot.slane %v4223_v18, 2 }
 0x127   : > { %3517 = vmatpush3.bf16.msra.mxu1 %v3805_v17  ;;  %3520 = vmatprep.mubr.msk.bf16.mxu1 %vm3987_vm0, %v3986_v25 }
 0x128   : > { %v1136_v22 = vrot.slane %v859_v19, 2  ;;  %v1137_v23 = vrot.slane %v861_v20, 3  ;;  %3518 = vmatprep.subr.bf16.mxu1 %v3986_v25  ;;  %v863_v24 = vrot.slane %v861_v20, 1 }
 0x12a   : > { %v1138_v28 = vor.u32 %v1137_v23, %v1136_v22  ;;  %v864_v30 = vor.u32 %v863_v24, %v859_v19 }
 0x12b   : > { %3519 = vmatpush3.bf16.msra.mxu1 %v3807_v21 }
 0x12c   : > { %3553 = vmatmul.mubr.msk.bf16.vlgmr.msra.gmra.mrb[16].mxu0 %vm664_vm1, %v1138_v28  ;;  %3524 = vmatprep.subr.bf16.mxu1 %v3986_v25 }
 0x12d   : > { %3565 = vmatpush3.bf16.msra.mxu0 %v3808_v26  ;;  %3568 = vmatprep.mubr.msk.bf16.mxu0 %vm3987_vm0, %v3986_v25 }
 0x12e   : > { %3521 = vmatmul.mubr.msk.bf16.vlgmr.msra.gmra.mrb[12].mxu1 %vm664_vm1, %v864_v30  ;;  %3566 = vmatprep.subr.bf16.mxu0 %v3986_v25 }
 0x12f   : > { %3525 = vmatpush3.bf16.msra.mxu1 %v3809_v29  ;;  %3528 = vmatprep.mubr.msk.bf16.mxu1 %vm3987_vm0, %v3986_v25 }
 0x130   : > { %3526 = vmatprep.subr.bf16.mxu1 %v3986_v25 }
 0x131   : > { %3567 = vmatpush3.bf16.msra.mxu0 %v3810_v31 }
 0x132   : > { %3580 = vmatprep.subr.bf16.mxu0 %v3986_v25 }
 0x133   : > { %3527 = vmatpush3.bf16.msra.mxu1 %v3811_v33 }
 0x134   : > { %3569 = vmatmul.mubr.msk.bf16.vlgmr.msra.gmra.mrb[20].mxu0 %vm664_vm1, %v1256_v37  ;;  %3532 = vmatprep.subr.bf16.mxu1 %v3986_v25 }
 0x135   : > { %3581 = vmatpush3.bf16.msra.mxu0 %v3812_v35  ;;  %3584 = vmatprep.mubr.msk.bf16.mxu0 %vm3987_vm0, %v3986_v25 }
 0x136   : > { %3529 = vmatmul.mubr.msk.bf16.vlgmr.msra.gmra.mrb[16].mxu1 %vm664_vm1, %v932_v39  ;;  %3582 = vmatprep.subr.bf16.mxu0 %v3986_v25 }
 0x137   : > { %3533 = vmatpush3.bf16.msra.mxu1 %v3813_v38  ;;  %3536 = vmatprep.mubr.msk.bf16.mxu1 %vm3987_vm0, %v3986_v25 }
 0x138   : > { %3534 = vmatprep.subr.bf16.mxu1 %v3986_v25 }
 0x139   : > { %3583 = vmatpush3.bf16.msra.mxu0 %v3814_v40 }
 0x13a   : > { %3596 = vmatprep.subr.bf16.mxu0 %v3986_v25 }
 0x13b   : > { %3535 = vmatpush3.bf16.msra.mxu1 %v3815_v43 }
 0x13c   : > { %3585 = vmatmul.mubr.msk.bf16.vlgmr.msra.gmra.mrb[24].mxu0 %vm664_vm1, %v1374_v48  ;;  %3540 = vmatprep.subr.bf16.mxu1 %v3986_v25 }
 0x13d   : > { %3597 = vmatpush3.bf16.msra.mxu0 %v3816_v47  ;;  %3600 = vmatprep.mubr.msk.bf16.mxu0 %vm3987_vm0, %v3986_v25 }
 0x13e   : > { %3537 = vmatmul.mubr.msk.bf16.vlgmr.msra.gmra.mrb[20].mxu1 %vm664_vm1, %v1001_v50  ;;  %3598 = vmatprep.subr.bf16.mxu0 %v3986_v25 }
 0x13f   : > { %3541 = vmatpush3.bf16.msra.mxu1 %v3817_v49  ;;  %3544 = vmatprep.mubr.msk.bf16.mxu1 %vm3987_vm0, %v3986_v25 }
 0x140   : > { %3542 = vmatprep.subr.bf16.mxu1 %v3986_v25 }
 0x141   : > { %3599 = vmatpush3.bf16.msra.mxu0 %v3818_v51 }
 0x142   : > { %3612 = vmatprep.subr.bf16.mxu0 %v3986_v25 }
 0x143   : > { %3543 = vmatpush3.bf16.msra.mxu1 %v3819_v54 }
 0x144   : > { %3601 = vmatmul.mubr.msk.bf16.vlgmr.msra.gmra.mrb[28].mxu0 %vm664_vm1, %v1491_v56  ;;  %3556 = vmatprep.subr.bf16.mxu1 %v3986_v25 }
 0x145   : > { %3613 = vmatpush3.bf16.msra.mxu0 %v3820_v55  ;;  %3616 = vmatprep.mubr.msk.bf16.mxu0 %vm3987_vm0, %v3986_v25 }
 0x146   : > { %3545 = vmatmul.mubr.msk.bf16.vlgmr.msra.gmra.mrb[24].mxu1 %vm664_vm1, %v1069_v58  ;;  %3614 = vmatprep.subr.bf16.mxu0 %v3986_v25 }
 0x147   : > { %3557 = vmatpush3.bf16.msra.mxu1 %v3821_v57  ;;  %3560 = vmatprep.mubr.msk.bf16.mxu1 %vm3987_vm0, %v3986_v25 }
 0x148   : > { %3558 = vmatprep.subr.bf16.mxu1 %v3986_v25 }
 0x149   : > { %3615 = vmatpush3.bf16.msra.mxu0 %v3822_v59 }
 0x14a   : > { %3632 = vmatprep.subr.bf16.mxu0 %v3986_v25 }
 0x14b   : > { %3559 = vmatpush3.bf16.msra.mxu1 %v3823_v62 }
 0x14c   : > { %3617 = vmatmul.mubr.msk.bf16.vlgmr.msra.gmra.mrb[32].mxu0 %vm664_vm1, %v1608_v63  ;;  %3572 = vmatprep.subr.bf16.mxu1 %v3986_v25 }
 0x14d   : > { %3640 = vmatprep.mubr.msk.bf16.mxu0 %vm3987_vm0, %v3986_v25  ;;  %3633 = vmatpush3.bf16.msra.mxu0 %v3831_v9 }
 0x14e   : > { %3561 = vmatmul.mubr.msk.bf16.vlgmr.msra.gmra.mrb[28].mxu1 %vm664_vm1, %v4186_v42  ;;  %v3830_v42 = vld [vmem:[%s4769_s5 + $0x20] sm:$0xff]   ;;  %3634 = vmatprep.subr.bf16.mxu0 %v3986_v25 }
 0x14f   : > { %3573 = vmatpush3.bf16.msra.mxu1 %v3824_v0  ;;  %3576 = vmatprep.mubr.msk.bf16.mxu1 %vm3987_vm0, %v3986_v25 }
 0x150   : > { %3574 = vmatprep.subr.bf16.mxu1 %v3986_v25 }
 0x151   : > { %3635 = vmatpush3.bf16.msra.mxu0 %v3833_v10 }
 0x152   : > { %3636 = vmatprep.subr.bf16.mxu0 %v3986_v25 }
 0x153   : > { %3575 = vmatpush3.bf16.msra.mxu1 %v3825_v1 }
 0x154   : > { %3588 = vmatprep.subr.bf16.mxu1 %v3986_v25 }
 0x155   : > { %3637 = vmatpush3.bf16.msra.mxu0 %v3835_v12 }
 0x156   : > { %3577 = vmatmul.mubr.msk.bf16.vlgmr.msra.gmra.mrb[32].mxu1 %vm664_vm1, %v4208_v6  ;;  %v3832_v6 = vld [vmem:[%s4769_s5 + $0x28] sm:$0xff]   ;;  %3638 = vmatprep.subr.bf16.mxu0 %v3986_v25 }
 0x157   : > { %3589 = vmatpush3.bf16.msra.mxu1 %v3826_v2  ;;  %3592 = vmatprep.mubr.msk.bf16.mxu1 %vm3987_vm0, %v3986_v25 }
 0x158   : > { %3590 = vmatprep.subr.bf16.mxu1 %v3986_v25 }
 0x159   : > { %3639 = vmatpush3.bf16.msra.mxu0 %v3837_v14 }
 0x15a   : > { %3656 = vmatprep.subr.bf16.mxu0 %v3986_v25 }
 0x15b   : > { %3591 = vmatpush3.bf16.msra.mxu1 %v3827_v3 }
 0x15c   : > { %3604 = vmatprep.subr.bf16.mxu1 %v3986_v25 }
 0x15e   : > { %3593 = vmatmul.mubr.msk.bf16.vlgmr.msra.gmra.mrb[36].mxu1 %vm664_vm1, %v1432_v5 }
 0x15f   : > { %3605 = vmatpush3.bf16.msra.mxu1 %v3828_v4  ;;  %3608 = vmatprep.mubr.msk.bf16.mxu1 %vm3987_vm0, %v3986_v25 }
 0x160   : > { %3606 = vmatprep.subr.bf16.mxu1 %v3986_v25 }
 0x163   : > { %3607 = vmatpush3.bf16.msra.mxu1 %v3829_v7 }
 0x164   : > { %3620 = vmatprep.subr.bf16.mxu1 %v3986_v25 }
 0x166   : > { %3609 = vmatmul.mubr.msk.bf16.vlgmr.msra.gmra.mrb[40].mxu1 %vm664_vm1, %v1549_v8 }
 0x167   : > { %3628 = vmatprep.mubr.msk.bf16.mxu1 %vm3987_vm0, %v3986_v25  ;;  %3621 = vmatpush3.bf16.msra.mxu1 %v3830_v42 }
 0x168   : > { %3622 = vmatprep.subr.bf16.mxu1 %v3986_v25 }
 0x16b   : > { %3623 = vmatpush3.bf16.msra.mxu1 %v3832_v6 }
 0x16c   : > { %3624 = vmatprep.subr.bf16.mxu1 %v3986_v25 }
 0x16f   : > { %3625 = vmatpush3.bf16.msra.mxu1 %v3834_v11 }
 0x170   : > { %3626 = vmatprep.subr.bf16.mxu1 %v3986_v25 }
 0x173   : > { %3627 = vmatpush3.bf16.msra.mxu1 %v3836_v13 }
 0x174   : > { %3644 = vmatprep.subr.bf16.mxu1 %v3986_v25 }
 0x1e9   : > { %v702_v15 = vpop.f32.mrb[0].mxu1 }
 0x1ea   : > { %v3498_v16 = vpop.f32.mrb[1].mxu1 }
 0x1eb   : > { %v705_v17 = vpop.f32.mrb[2].mxu1 }
 0x1ec   : > { %v3499_v18 = vpop.f32.mrb[3].mxu1 }
 0x1f1   : > { %v774_v19 = vpop.f32.mrb[4].mxu1 }
 0x1f2   : > { %v3506_v20 = vpop.f32.mrb[5].mxu1 }
 0x1f3   : > { %v777_v21 = vpop.f32.mrb[6].mxu1 }
 0x1f4   : > { %v3507_v22 = vpop.f32.mrb[7].mxu1 }
 0x1f9   : > { %v842_v23 = vpop.f32.mrb[8].mxu1 }
 0x1fa   : > { %v3514_v24 = vpop.f32.mrb[9].mxu1 }
 0x1fb   : > { %v845_v26 = vpop.f32.mrb[10].mxu1 }
 0x1fc   : > { %v3515_v27 = vpop.f32.mrb[11].mxu1 }
 0x1ff   : > { %v1188_v28 = vpop.f32.mrb[16].mxu0 }
 0x200   : > { %v3554_v29 = vpop.f32.mrb[17].mxu0 }
 0x201   : > { %v914_v30 = vpop.f32.mrb[12].mxu1  ;;  %v1191_v31 = vpop.f32.mrb[18].mxu0 }
 0x202   : > { %v3522_v32 = vpop.f32.mrb[13].mxu1  ;;  %v3555_v33 = vpop.f32.mrb[19].mxu0 }
 0x203   : > { %v917_v34 = vpop.f32.mrb[14].mxu1 }
 0x204   : > { %v3523_v35 = vpop.f32.mrb[15].mxu1 }
 0x207   : > { %v1306_v36 = vpop.f32.mrb[20].mxu0 }
 0x208   : > { %v1307_v37 = vadd.f32 %v1306_v36, %v774_v19  ;;  %v3570_v38 = vpop.f32.mrb[21].mxu0 }
 0x209   : > { %v982_v39 = vpop.f32.mrb[16].mxu1  ;;  %v1309_v40 = vpop.f32.mrb[22].mxu0 }
 0x20a   : > { %v1310_v41 = vadd.f32 %v1309_v40, %v777_v21  ;;  %v3530_v43 = vpop.f32.mrb[17].mxu1  ;;  %v3571_v44 = vpop.f32.mrb[23].mxu0 }
 0x20b   : > { %v985_v45 = vpop.f32.mrb[18].mxu1 }
 0x20c   : > { %v3531_v46 = vpop.f32.mrb[19].mxu1 }
 0x20f   : > { %v1424_v47 = vpop.f32.mrb[24].mxu0 }
 0x210   : > { %v1425_v48 = vadd.f32 %v1424_v47, %v914_v30  ;;  %v3586_v49 = vpop.f32.mrb[25].mxu0  ;;  %v3151_v47 = vld [vmem:[%s4768_s4] ss:$0 sm:$0xff] }
 0x211   : > { %v1051_v50 = vpop.f32.mrb[20].mxu1  ;;  %v1427_v51 = vpop.f32.mrb[26].mxu0 }
 0x212   : > { %v1428_v52 = vadd.f32 %v1427_v51, %v917_v34  ;;  %v3538_v53 = vpop.f32.mrb[21].mxu1  ;;  %v3587_v54 = vpop.f32.mrb[27].mxu0 }
 0x213   : > { %v1054_v55 = vpop.f32.mrb[22].mxu1  ;;  %v3839_v53 = vld [vmem:[%s4769_s5 + $0xe0] sm:$0xff]  }
 0x214   : > { %v3539_v56 = vpop.f32.mrb[23].mxu1 }
 0x215   : > { %v3840_v56 = vld [vmem:[%s4769_s5 + $0xa8] sm:$0xff]  }
 0x217   : > { %v1541_v57 = vpop.f32.mrb[28].mxu0 }
 0x218   : > { %v1542_v58 = vadd.f32 %v1541_v57, %v1051_v50  ;;  %v3602_v59 = vpop.f32.mrb[29].mxu0  ;;  %v3841_v57 = vld [vmem:[%s4769_s5 + $0xe8] sm:$0xff]  }
 0x219   : > { %v1119_v60 = vpop.f32.mrb[24].mxu1  ;;  %v1544_v61 = vpop.f32.mrb[30].mxu0  ;;  %v3842_v59 = vld [vmem:[%s4769_s5 + $0xb0] sm:$0xff]  }
 0x21a   : > { %v1545_v62 = vadd.f32 %v1544_v61, %v1054_v55  ;;  %v3546_v63 = vpop.f32.mrb[25].mxu1  ;;  %v3603_v0 = vpop.f32.mrb[31].mxu0 }
 0x21b   : > { %v1122_v1 = vpop.f32.mrb[26].mxu1  ;;  %v3845_v63 = vld [vmem:[%s4769_s5 + $0xf8] sm:$0xff]  }
 0x21c   : > { %v3547_v2 = vpop.f32.mrb[27].mxu1 }
 0x21d   : > { %v3847_v2 = vld [vmem:[%s4769_s5] sm:$0xff]  }
 0x21f   : > { %v1658_v3 = vpop.f32.mrb[32].mxu0 }
 0x220   : > { %v1659_v4 = vadd.f32 %v1658_v3, %v1188_v28  ;;  %v3618_v5 = vpop.f32.mrb[33].mxu0 }
 0x221   : > { %v1244_v7 = vpop.f32.mrb[28].mxu1  ;;  %v1661_v8 = vpop.f32.mrb[34].mxu0  ;;  %v3848_v5 = vld [vmem:[%s4769_s5 + $0x108] sm:$0xff]  }
 0x222   : > { %v1245_v42 = vadd.f32 %v1244_v7, %v702_v15  ;;  %v1662_v9 = vadd.f32 %v1661_v8, %v1191_v31  ;;  %v3562_v6 = vpop.f32.mrb[29].mxu1  ;;  %v3619_v10 = vpop.f32.mrb[35].mxu0  ;;  %v3849_v7 = vld [vmem:[%s4769_s5 + $0x8] sm:$0xff]   ;;  %v3850_v8 = vld [vmem:[%s4769_s5 + $0x110] sm:$0xff]  }
 0x223   : > { %v1247_v11 = vpop.f32.mrb[30].mxu1  ;;  %v3853_v6 = vld [vmem:[%s4769_s5 + $0x18] sm:$0xff]   ;;  %v3854_v10 = vld [vmem:[%s4769_s5 + $0x40] sm:$0xff]  }
 0x224   : > { %v1665_v12 = vadd.f32 %v1307_v37, %v1245_v42  ;;  %v1248_v13 = vadd.f32 %v1247_v11, %v705_v17  ;;  %v3563_v14 = vpop.f32.mrb[31].mxu1  ;;  %v3851_v42 = vld [vmem:[%s4769_s5 + $0x10] sm:$0xff]   ;;  %v3855_v11 = vld [vmem:[%s4769_s5 + $0x80] sm:$0xff]  }
 0x225   : > { %v3857_v14 = vld [vmem:[%s4769_s5 + $0x88] sm:$0xff]  }
 0x226   : > { %v1666_v16 = vadd.f32 %v1310_v41, %v1248_v13  ;;  %v3856_v13 = vld [vmem:[%s4769_s5 + $0x48] sm:$0xff]  }
 0x229   : > { %v1362_v18 = vpop.f32.mrb[32].mxu1 }
 0x22a   : > { %v1363_v19 = vadd.f32 %v1362_v18, %v842_v23  ;;  %v3578_v20 = vpop.f32.mrb[33].mxu1  ;;  %v3859_v18 = vld [vmem:[%s4769_s5 + $0x90] sm:$0xff]  }
 0x22b   : > { %v1365_v21 = vpop.f32.mrb[34].mxu1  ;;  %v3861_v20 = vld [vmem:[%s4769_s5 + $0x98] sm:$0xff]  }
 0x22c   : > { %v1667_v22 = vadd.f32 %v1425_v48, %v1363_v19  ;;  %v1366_v24 = vadd.f32 %v1365_v21, %v845_v26  ;;  %v3579_v27 = vpop.f32.mrb[35].mxu1  ;;  %v3860_v19 = vld [vmem:[%s4769_s5 + $0x58] sm:$0xff]   ;;  %v3862_v21 = vld [vmem:[%s4769_s5 + $0xc0] sm:$0xff]  }
 0x22d   : > { %v3863_v27 = vld [vmem:[%s4769_s5 + $0xc8] sm:$0xff]  }
 0x22e   : > { %v1673_v28 = vadd.f32 %v1667_v22, %v1665_v12  ;;  %v1668_v29 = vadd.f32 %v1428_v52, %v1366_v24  ;;  %v3838_v52 = vld [vmem:[%s4769_s5 + $0xa0] sm:$0xff]  }
 0x230   : > { %v1674_v30 = vadd.f32 %v1668_v29, %v1666_v16  ;;  %v3858_v16 = vld [vmem:[%s4769_s5 + $0x50] sm:$0xff]   ;;  %v3865_v29 = vld [vmem:[%s4769_s5 + $0xd8] sm:$0xff]  }
 0x231   : > { %v1482_v32 = vpop.f32.mrb[36].mxu1 }
 0x232   : > { %v1483_v15 = vadd.f32 %v1482_v32, %v982_v39  ;;  %v3594_v31 = vpop.f32.mrb[37].mxu1  ;;  %v3868_v32 = vld [vmem:[%s4771_s7 + $0x4] ss:$16 sps:$4 sm:$0xff]  }
 0x233   : > { %v1485_v33 = vpop.f32.mrb[38].mxu1  ;;  %v3874_v31 = vld [vmem:[%s4771_s7 + $0x24] ss:$16 sps:$4 sm:$0xff]  }
 0x234   : > { %v1669_v34 = vadd.f32 %v1542_v58, %v1483_v15  ;;  %v1486_v35 = vadd.f32 %v1485_v33, %v985_v45  ;;  %v3595_v36 = vpop.f32.mrb[39].mxu1  ;;  %v3869_v15 = vld [vmem:[%s4771_s7 + $0x8] ss:$16 sps:$4 sm:$0xff]   ;;  %v3877_v33 = vld [vmem:[%s4771_s7 + $0x2c] ss:$16 sps:$4 sm:$0xff]  }
 0x235   : > { %v3880_v36 = vld [vmem:[%s4771_s7 + $0x44] ss:$16 sps:$4 sm:$0xff]  }
 0x236   : > { %v1670_v17 = vadd.f32 %v1545_v62, %v1486_v35  ;;  %v3844_v62 = vld [vmem:[%s4769_s5 + $0xb8] sm:$0xff]  }
 0x237   : > { %v3875_v35 = vld [vmem:[%s4771_s7 + $0x28] ss:$16 sps:$4 sm:$0xff]  }
 0x239   : > { %v1599_v37 = vpop.f32.mrb[40].mxu1 }
 0x23a   : > { %v1600_v38 = vadd.f32 %v1599_v37, %v1119_v60  ;;  %v3610_v40 = vpop.f32.mrb[41].mxu1  ;;  %v3843_v60 = vld [vmem:[%s4769_s5 + $0xf0] sm:$0xff]  }
 0x23b   : > { %v1602_v23 = vpop.f32.mrb[42].mxu1  ;;  %v3878_v37 = vld [vmem:[%s4771_s7 + $0x40] ss:$16 sps:$4 sm:$0xff]   ;;  %v3886_v40 = vld [vmem:[%s4771_s7 + $0x64] ss:$16 sps:$4 sm:$0xff]  }
 0x23c   : > { %v1671_v41 = vadd.f32 %v1659_v4, %v1600_v38  ;;  %v1603_v43 = vadd.f32 %v1602_v23, %v1122_v1  ;;  %v3611_v44 = vpop.f32.mrb[43].mxu1  ;;  %v3846_v1 = vld [vmem:[%s4769_s5 + $0x100] sm:$0xff]   ;;  %v3881_v38 = vld [vmem:[%s4771_s7 + $0x48] ss:$16 sps:$4 sm:$0xff]   ;;  %v3889_v23 = vld [vmem:[%s4771_s7 + $0x6c] ss:$16 sps:$4 sm:$0xff]  }
 0x23d   : > { %v3988_v44 = vmov 0  }
 0x23e   : > { %v1675_v26 = vadd.f32 %v1671_v41, %v1669_v34  ;;  %v1672_v46 = vadd.f32 %v1662_v9, %v1603_v43  ;;  %v3852_v9 = vld [vmem:[%s4769_s5 + $0x118] sm:$0xff]   ;;  %v3872_v34 = vld [vmem:[%s4771_s7 + $0x20] ss:$16 sps:$4 sm:$0xff]  }
 0x23f   : > { %v3884_v41 = vld [vmem:[%s4771_s7 + $0x60] ss:$16 sps:$4 sm:$0xff]   ;;  %v3887_v43 = vld [vmem:[%s4771_s7 + $0x68] ss:$16 sps:$4 sm:$0xff]  }
 0x240   : > { %v1677_v39 = vadd.f32 %v1675_v26, %v1673_v28  ;;  %v1676_v48 = vadd.f32 %v1672_v46, %v1670_v17  ;;  %v3864_v28 = vld [vmem:[%s4769_s5 + $0xd0] sm:$0xff]   ;;  %v3883_v17 = vld [vmem:[%s4771_s7 + $0x4c] ss:$16 sps:$4 sm:$0xff]   ;;  %v3890_v26 = vld [vmem:[%s4773_s9 + $0x40] sm:$0xff]  }
 0x241   : > { %v3891_v46 = vld [vmem:[%s4773_s9 + $0xc0] sm:$0xff]  }
 0x242   : > { %v1686_v49 = vadd.f32 %v3151_v47, %v1677_v39  ;;  %v1678_v50 = vadd.f32 %v1676_v48, %v1674_v30  ;;  %v3866_v30 = vld [vmem:[%s4771_s7] ss:$16 sps:$4 sm:$0xff]  }
 0x244   : > { %v1688_v45 = vmax.f32 %v1686_v49, 0.0  ;;  %v1687_v58 = vadd.f32 %v3151_v47, %v1678_v50 }
 0x246   : > { %v4413_v51 = vpack.c.bf16 %v1688_v45, %v1688_v45  ;;  %v1689_v61 = vmax.f32 %v1687_v58, 0.0 }
 0x248   : > { %v1709_v54 = vshrl.u32 %v4413_v51, 16  ;;  %v1798_v55 = vrot.slane %v4413_v51, 2  ;;  %v4453_v0 = vpack.c.bf16 %v1689_v61, %v1689_v61  ;;  %v1884_v3 = vrot.slane %v4413_v51, 3 }
 0x249   : > { %v2185_v22 = vrot.slane %v4413_v51, 1 }
 0x24a   : > { %3629 = vmatmul.mubr.msk.bf16.vlgmr.msra.gmra.mrb[44].mxu1 %vm1735_vm2, %v1709_v54  ;;  %3641 = vmatmul.mubr.msk.bf16.vlgmr.msra.gmra.mrb[36].mxu0 %vm1735_vm2, %v1798_v55  ;;  %v1972_v4 = vshrl.u32 %v4453_v0, 16  ;;  %v2051_v12 = vrot.slane %v4453_v0, 1  ;;  %v2253_v24 = vrot.slane %v1709_v54, 2 }
 0x24b   : > { %3645 = vmatpush3.bf16.msra.mxu1 %v3838_v52  ;;  %3657 = vmatpush3.bf16.msra.mxu0 %v3839_v53 }
 0x24c   : > { %3646 = vmatprep.subr.bf16.mxu1 %v3986_v25  ;;  %3658 = vmatprep.subr.bf16.mxu0 %v3986_v25 }
 0x24d   : > { %3652 = vmatprep.mubr.msk.bf16.mxu1 %vm3987_vm0, %v3986_v25  ;;  %3664 = vmatprep.mubr.msk.bf16.mxu0 %vm3987_vm0, %v3986_v25 }
 0x24f   : > { %3647 = vmatpush3.bf16.msra.mxu1 %v3840_v56  ;;  %3659 = vmatpush3.bf16.msra.mxu0 %v3841_v57 }
 0x250   : > { %3648 = vmatprep.subr.bf16.mxu1 %v3986_v25  ;;  %3660 = vmatprep.subr.bf16.mxu0 %v3986_v25 }
 0x253   : > { %3649 = vmatpush3.bf16.msra.mxu1 %v3842_v59  ;;  %3661 = vmatpush3.bf16.msra.mxu0 %v3843_v60 }
 0x254   : > { %3650 = vmatprep.subr.bf16.mxu1 %v3986_v25  ;;  %3662 = vmatprep.subr.bf16.mxu0 %v3986_v25 }
 0x257   : > { %3651 = vmatpush3.bf16.msra.mxu1 %v3844_v62  ;;  %3663 = vmatpush3.bf16.msra.mxu0 %v3845_v63 }
 0x258   : > { %3668 = vmatprep.subr.bf16.mxu1 %v3986_v25  ;;  %3680 = vmatprep.subr.bf16.mxu0 %v3986_v25 }
 0x25a   : > { %3653 = vmatmul.mubr.msk.bf16.vlgmr.msra.gmra.mrb[48].mxu1 %vm1735_vm2, %v1884_v3  ;;  %3665 = vmatmul.mubr.msk.bf16.vlgmr.msra.gmra.mrb[40].mxu0 %vm1735_vm2, %v1972_v4 }
 0x25b   : > { %3669 = vmatpush3.bf16.msra.mxu1 %v3846_v1  ;;  %3681 = vmatpush3.bf16.msra.mxu0 %v3847_v2 }
 0x25c   : > { %3670 = vmatprep.subr.bf16.mxu1 %v3986_v25  ;;  %3682 = vmatprep.subr.bf16.mxu0 %v3986_v25 }
 0x25d   : > { %3676 = vmatprep.mubr.msk.bf16.mxu1 %vm3987_vm0, %v3986_v25  ;;  %3688 = vmatprep.mubr.msk.bf16.mxu0 %vm3987_vm0, %v3986_v25 }
 0x25f   : > { %3671 = vmatpush3.bf16.msra.mxu1 %v3848_v5  ;;  %3683 = vmatpush3.bf16.msra.mxu0 %v3849_v7 }
 0x260   : > { %3672 = vmatprep.subr.bf16.mxu1 %v3986_v25  ;;  %3684 = vmatprep.subr.bf16.mxu0 %v3986_v25 }
 0x263   : > { %3673 = vmatpush3.bf16.msra.mxu1 %v3850_v8  ;;  %3685 = vmatpush3.bf16.msra.mxu0 %v3851_v42 }
 0x264   : > { %3674 = vmatprep.subr.bf16.mxu1 %v3986_v25  ;;  %3686 = vmatprep.subr.bf16.mxu0 %v3986_v25 }
 0x267   : > { %3675 = vmatpush3.bf16.msra.mxu1 %v3852_v9  ;;  %3687 = vmatpush3.bf16.msra.mxu0 %v3853_v6 }
 0x268   : > { %3692 = vmatprep.subr.bf16.mxu1 %v3986_v25  ;;  %3704 = vmatprep.subr.bf16.mxu0 %v3986_v25 }
 0x26a   : > { %3677 = vmatmul.mubr.msk.bf16.vlgmr.msra.gmra.mrb[52].mxu1 %vm1735_vm2, %v2051_v12  ;;  %3689 = vmatmul.mubr.msk.bf16.vlgmr.msra.gmra.mrb[44].mxu0 %vm1735_vm2, %v4413_v51 }
 0x26b   : > { %3693 = vmatpush3.bf16.msra.mxu1 %v3854_v10  ;;  %3705 = vmatpush3.bf16.msra.mxu0 %v3855_v11 }
 0x26c   : > { %3694 = vmatprep.subr.bf16.mxu1 %v3986_v25  ;;  %3706 = vmatprep.subr.bf16.mxu0 %v3986_v25 }
 0x26d   : > { %3700 = vmatprep.mubr.msk.bf16.mxu1 %vm3987_vm0, %v3986_v25  ;;  %3712 = vmatprep.mubr.msk.bf16.mxu0 %vm3987_vm0, %v3986_v25 }
 0x26f   : > { %3695 = vmatpush3.bf16.msra.mxu1 %v3856_v13  ;;  %3707 = vmatpush3.bf16.msra.mxu0 %v3857_v14 }
 0x270   : > { %3696 = vmatprep.subr.bf16.mxu1 %v3986_v25  ;;  %3708 = vmatprep.subr.bf16.mxu0 %v3986_v25 }
 0x273   : > { %3697 = vmatpush3.bf16.msra.mxu1 %v3858_v16  ;;  %3709 = vmatpush3.bf16.msra.mxu0 %v3859_v18 }
 0x274   : > { %3698 = vmatprep.subr.bf16.mxu1 %v3986_v25  ;;  %3710 = vmatprep.subr.bf16.mxu0 %v3986_v25 }
 0x277   : > { %3699 = vmatpush3.bf16.msra.mxu1 %v3860_v19  ;;  %3711 = vmatpush3.bf16.msra.mxu0 %v3861_v20 }
 0x278   : > { %3716 = vmatprep.subr.bf16.mxu1 %v3986_v25  ;;  %2516 = vmatprep.subr.bf16.mxu0 %v3868_v32 }
 0x27a   : > { %3701 = vmatmul.mubr.msk.bf16.vlgmr.msra.gmra.mrb[56].mxu1 %vm1735_vm2, %v2185_v22  ;;  %3713 = vmatmul.mubr.msk.bf16.vlgmr.msra.gmra.mrb[48].mxu0 %vm1735_vm2, %v2253_v24 }
 0x27b   : > { %3717 = vmatpush3.bf16.msra.mxu1 %v3862_v21  ;;  %3724 = vmatprep.mubr.msk.bf16.mxu1 %vm3987_vm0, %v3986_v25 }
 0x27c   : > { %3718 = vmatprep.subr.bf16.mxu1 %v3986_v25  ;;  %2517 = vmatpush1.bf16.msra.mxu0 %v3866_v30 }
 0x27d   : > { %2518 = vmatprep.subr.bf16.mxu0 %v3874_v31  ;;  %2548 = vmatprep.mubr.bf16.mxu0 %v3988_v44 }
 0x27f   : > { %3719 = vmatpush3.bf16.msra.mxu1 %v3863_v27 }
 0x280   : > { %3720 = vmatprep.subr.bf16.mxu1 %v3986_v25  ;;  %2519 = vmatpush1.bf16.msra.mxu0 %v3872_v34  ;;  %v3895_v34 = vld [vmem:[%s4773_s9 + $0xc8] sm:$0xff]  }
 0x281   : > { %2520 = vmatprep.subr.bf16.mxu0 %v3880_v36  ;;  %v3897_v36 = vld [vmem:[%s4773_s9 + $0x88] sm:$0xff]  }
 0x283   : > { %3721 = vmatpush3.bf16.msra.mxu1 %v3864_v28  ;;  %v2391_v28 = vld [vmem:[%s4770_s6] sm:$0x1] }
 0x284   : > { %3722 = vmatprep.subr.bf16.mxu1 %v3986_v25  ;;  %v3871_v25 = vld [vmem:[%s4771_s7 + $0xc] ss:$16 sps:$4 sm:$0xff]   ;;  %2521 = vmatpush1.bf16.msra.mxu0 %v3878_v37  ;;  %v3899_v37 = vld [vmem:[%s4773_s9 + $0xd0] sm:$0xff]  }
 0x285   : > { %2522 = vmatprep.subr.bf16.mxu0 %v3886_v40  ;;  %v3901_v40 = vld [vmem:[%s4773_s9 + $0x90] sm:$0xff]  }
 0x287   : > { %3723 = vmatpush3.bf16.msra.mxu1 %v3865_v29 }
 0x288   : > { %2557 = vmatprep.subr.bf16.mxu1 %v3871_v25  ;;  %2523 = vmatpush1.bf16.msra.mxu0 %v3884_v41  ;;  %v3893_v25 = vld [vmem:[%s4773_s9 + $0x80] sm:$0xff]   ;;  %v3903_v41 = vld [vmem:[%s4773_s9 + $0xd8] sm:$0xff]  }
 0x289   : > { %3448 = vmatprep.subr.bf16.mxu0 %v3890_v26  ;;  %v3906_v26 = vld [vmem:[%s4773_s9 + $0x60] sm:$0xff]  }
 0x28a   : > { %3725 = vmatmul.mubr.msk.bf16.vlgmr.msra.gmra.mrb[60].mxu1 %vm1735_vm2, %v4453_v0 }
 0x28b   : > { %2558 = vmatpush1.bf16.msra.mxu1 %v3869_v15  ;;  %2589 = vmatprep.mubr.bf16.mxu1 %v3988_v44  ;;  %v3892_v15 = vld [vmem:[%s4773_s9] sm:$0xff]   ;;  %v3905_v44 = vld [vmem:[%s4773_s9 + $0x98] sm:$0xff]  }
 0x28c   : > { %2559 = vmatprep.subr.bf16.mxu1 %v3877_v33  ;;  %v3894_v33 = vld [vmem:[%s4773_s9 + $0x48] sm:$0xff]  }
 0x28f   : > { %2560 = vmatpush1.bf16.msra.mxu1 %v3875_v35  ;;  %v3896_v35 = vld [vmem:[%s4773_s9 + $0x8] sm:$0xff]  }
 0x290   : > { %2561 = vmatprep.subr.bf16.mxu1 %v3883_v17  ;;  %v3898_v17 = vld [vmem:[%s4773_s9 + $0x50] sm:$0xff]  }
 0x293   : > { %2562 = vmatpush1.bf16.msra.mxu1 %v3881_v38  ;;  %v3900_v38 = vld [vmem:[%s4773_s9 + $0x10] sm:$0xff]  }
 0x294   : > { %2563 = vmatprep.subr.bf16.mxu1 %v3889_v23  ;;  %v3902_v23 = vld [vmem:[%s4773_s9 + $0x58] sm:$0xff]  }
 0x297   : > { %2564 = vmatpush1.bf16.msra.mxu1 %v3887_v43  ;;  %v3904_v43 = vld [vmem:[%s4773_s9 + $0x18] sm:$0xff]  }
 0x298   : > { %3470 = vmatprep.subr.bf16.mxu1 %v3891_v46  ;;  %v3907_v46 = vld [vmem:[%s4773_s9 + $0xe0] sm:$0xff]  }
 0x31d   : > { %v1773_v47 = vpop.f32.mrb[44].mxu1  ;;  %v1860_v39 = vpop.f32.mrb[36].mxu0 }
 0x31e   : > { %v3630_v48 = vpop.f32.mrb[45].mxu1  ;;  %v3642_v49 = vpop.f32.mrb[37].mxu0 }
 0x31f   : > { %v1776_v50 = vpop.f32.mrb[46].mxu1  ;;  %v1863_v45 = vpop.f32.mrb[38].mxu0  ;;  %v3910_v48 = vld [vmem:[%s4773_s9 + $0x68] sm:$0xff]  }
 0x320   : > { %v3631_v51 = vpop.f32.mrb[47].mxu1  ;;  %v3643_v52 = vpop.f32.mrb[39].mxu0  ;;  %v3911_v49 = vld [vmem:[%s4773_s9 + $0xe8] sm:$0xff]  }
 0x321   : > { %v3912_v50 = vld [vmem:[%s4773_s9 + $0x28] sm:$0xff]   ;;  %v3914_v51 = vld [vmem:[%s4773_s9 + $0x70] sm:$0xff]  }
 0x322   : > { %v3913_v45 = vld [vmem:[%s4773_s9 + $0xa8] sm:$0xff]   ;;  %v3915_v52 = vld [vmem:[%s4773_s9 + $0xf0] sm:$0xff]  }
 0x32d   : > { %v1946_v53 = vpop.f32.mrb[48].mxu1  ;;  %v2035_v54 = vpop.f32.mrb[40].mxu0 }
 0x32e   : > { %v3654_v55 = vpop.f32.mrb[49].mxu1  ;;  %v3666_v56 = vpop.f32.mrb[41].mxu0 }
 0x32f   : > { %v1949_v57 = vpop.f32.mrb[50].mxu1  ;;  %v2038_v58 = vpop.f32.mrb[42].mxu0  ;;  %v3918_v55 = vld [vmem:[%s4773_s9 + $0x78] sm:$0xff]  }
 0x330   : > { %v3655_v59 = vpop.f32.mrb[51].mxu1  ;;  %v3667_v60 = vpop.f32.mrb[43].mxu0  ;;  %v3919_v56 = vld [vmem:[%s4773_s9 + $0xf8] sm:$0xff]  }
 0x331   : > { %v3920_v57 = vld [vmem:[%s4773_s9 + $0x38] sm:$0xff]   ;;  %v2493_v59 = vlaneseq }
 0x332   : > { %v3921_v58 = vld [vmem:[%s4773_s9 + $0xb8] sm:$0xff]  }
 0x333   : > { %v2494_v60 = vshrl.u32 %v2493_v59, 7 }
 0x33d   : > { %v2113_v61 = vpop.f32.mrb[52].mxu1  ;;  %v2179_v62 = vpop.f32.mrb[44].mxu0 }
 0x33e   : > { %v2180_v63 = vadd.f32 %v2179_v62, %v1773_v47  ;;  %v3678_v0 = vpop.f32.mrb[53].mxu1  ;;  %v3690_v1 = vpop.f32.mrb[45].mxu0  ;;  %v3908_v47 = vld [vmem:[%s4773_s9 + $0x20] sm:$0xff]   ;;  %v2503_v62 = vsub.s32 2, %v2494_v60 }
 0x33f   : > { %v2116_v2 = vpop.f32.mrb[54].mxu1  ;;  %v2182_v3 = vpop.f32.mrb[46].mxu0  ;;  %v2499_v0 = vsub.s32 1, %v2494_v60  ;;  %v2507_v1 = vsub.s32 3, %v2494_v60 }
 0x340   : > { %v3679_v4 = vpop.f32.mrb[55].mxu1  ;;  %v3691_v5 = vpop.f32.mrb[47].mxu0 }
 0x34d   : > { %v2247_v7 = vpop.f32.mrb[56].mxu1  ;;  %v2315_v8 = vpop.f32.mrb[48].mxu0 }
 0x34e   : > { %v2248_v42 = vadd.f32 %v2247_v7, %v1860_v39  ;;  %v2316_v9 = vadd.f32 %v2315_v8, %v1946_v53  ;;  %v3702_v6 = vpop.f32.mrb[57].mxu1  ;;  %v3714_v10 = vpop.f32.mrb[49].mxu0  ;;  %v3909_v39 = vld [vmem:[%s4773_s9 + $0xa0] sm:$0xff]   ;;  %v3916_v53 = vld [vmem:[%s4773_s9 + $0x30] sm:$0xff]  }
 0x34f   : > { %v2250_v11 = vpop.f32.mrb[58].mxu1  ;;  %v2318_v12 = vpop.f32.mrb[50].mxu0 }
 0x350   : > { %v2387_v13 = vadd.f32 %v2248_v42, %v2180_v63  ;;  %v3703_v14 = vpop.f32.mrb[59].mxu1  ;;  %v3715_v16 = vpop.f32.mrb[51].mxu0  ;;  %v2411_v63 = vld [vmem:[%s4772_s8] sm:$0xf] }
 0x351   : > { %v2504_v3 = vrot.slane %v2411_v63, %v2503_v62  ;;  %v2500_v4 = vrot.slane %v2411_v63, %v2499_v0  ;;  %v2508_v5 = vrot.slane %v2411_v63, %v2507_v1 }
 0x35d   : > { %v2381_v18 = vpop.f32.mrb[60].mxu1 }
 0x35e   : > { %v2382_v19 = vadd.f32 %v2381_v18, %v2035_v54  ;;  %v3726_v20 = vpop.f32.mrb[61].mxu1  ;;  %v3917_v54 = vld [vmem:[%s4773_s9 + $0xb0] sm:$0xff]  }
 0x35f   : > { %v2384_v21 = vpop.f32.mrb[62].mxu1 }
 0x360   : > { %v2388_v22 = vadd.f32 %v2382_v19, %v2316_v9  ;;  %v3727_v24 = vpop.f32.mrb[63].mxu1 }
 0x362   : > { %v2389_v27 = vadd.f32 %v2388_v22, %v2387_v13 }
 0x364   : > { %v2390_v29 = vadd.f32 %v2389_v27, %v2113_v61  ;;  %v2495_v61 = vsub.s32 0, %v2494_v60 }
 0x366   : > { %v2392_v30 = vadd.f32 %v2391_v28, %v2390_v29  ;;  %v2496_v2 = vrot.slane %v2411_v63, %v2495_v61 }
 0x368   : > { %v2393_v32 = vmax.f32 %v2392_v30, 0.0 }
 0x36a   : > { %v2394_v31 = vpack.c.bf16 %v2393_v32, %v2393_v32 }
 0x36c   : > { %3277 = vmatmul.mubr.msk.bf16.vlgmr.msra.gmra.mrb[52].mxu0 %vm1735_vm2, %v2394_v31  ;;  %3278 = vmatmul.mubr.msk.bf16.vlgmr.msra.gmra.mrb[64].mxu1 %vm1735_vm2, %v2394_v31 }
 0x36d   : > { %3449 = vmatpush3.bf16.msra.mxu0 %v3892_v15  ;;  %3471 = vmatpush3.bf16.msra.mxu1 %v3893_v25  ;;  %v2670_v15 = vld [vmem:[%s4774_s10] sm:$0x1] }
 0x36e   : > { %3450 = vmatprep.subr.bf16.mxu0 %v3894_v33  ;;  %3472 = vmatprep.subr.bf16.mxu1 %v3895_v34 }
 0x371   : > { %3451 = vmatpush3.bf16.msra.mxu0 %v3896_v35  ;;  %3473 = vmatpush3.bf16.msra.mxu1 %v3897_v36 }
 0x372   : > { %3452 = vmatprep.subr.bf16.mxu0 %v3898_v17  ;;  %3474 = vmatprep.subr.bf16.mxu1 %v3899_v37 }
 0x375   : > { %3453 = vmatpush3.bf16.msra.mxu0 %v3900_v38  ;;  %3475 = vmatpush3.bf16.msra.mxu1 %v3901_v40 }
 0x376   : > { %3454 = vmatprep.subr.bf16.mxu0 %v3902_v23  ;;  %3476 = vmatprep.subr.bf16.mxu1 %v3903_v41 }
 0x379   : > { %3455 = vmatpush3.bf16.msra.mxu0 %v3904_v43  ;;  %3477 = vmatpush3.bf16.msra.mxu1 %v3905_v44 }
 0x37a   : > { %3456 = vmatprep.subr.bf16.mxu0 %v3906_v26  ;;  %3478 = vmatprep.subr.bf16.mxu1 %v3907_v46 }
 0x37d   : > { %3457 = vmatpush3.bf16.msra.mxu0 %v3908_v47  ;;  %3479 = vmatpush3.bf16.msra.mxu1 %v3909_v39 }
 0x37e   : > { %3458 = vmatprep.subr.bf16.mxu0 %v3910_v48  ;;  %3480 = vmatprep.subr.bf16.mxu1 %v3911_v49 }
 0x381   : > { %3459 = vmatpush3.bf16.msra.mxu0 %v3912_v50  ;;  %3481 = vmatpush3.bf16.msra.mxu1 %v3913_v45 }
 0x382   : > { %3460 = vmatprep.subr.bf16.mxu0 %v3914_v51  ;;  %3482 = vmatprep.subr.bf16.mxu1 %v3915_v52 }
 0x385   : > { %3461 = vmatpush3.bf16.msra.mxu0 %v3916_v53  ;;  %3483 = vmatpush3.bf16.msra.mxu1 %v3917_v54 }
 0x386   : > { %3462 = vmatprep.subr.bf16.mxu0 %v3918_v55  ;;  %3484 = vmatprep.subr.bf16.mxu1 %v3919_v56 }
 0x389   : > { %3463 = vmatpush3.bf16.msra.mxu0 %v3920_v57  ;;  %3485 = vmatpush3.bf16.msra.mxu1 %v3921_v58 }
 0x43f   : > { %v2550_v7 = vpop.f32.mrb[52].mxu0  ;;  %v2591_v8 = vpop.f32.mrb[64].mxu1 }
 0x440   : > { %v2551_v42 = vadd.f32 %v2550_v7, %v2496_v2  ;;  %v2592_v9 = vadd.f32 %v2591_v8, %v2504_v3  ;;  %v2552_v6 = vpop.f32.mrb[53].mxu0  ;;  %v2593_v10 = vpop.f32.mrb[65].mxu1 }
 0x441   : > { %v2553_v11 = vadd.f32 %v2552_v6, %v2500_v4  ;;  %v2594_v12 = vadd.f32 %v2593_v10, %v2508_v5  ;;  %v2554_v13 = vpop.f32.mrb[54].mxu0  ;;  %v2595_v14 = vpop.f32.mrb[66].mxu1 }
 0x442   : > { %v2598_v16 = vmax.f32 %v2551_v42, 0.0  ;;  %v2600_v18 = vmax.f32 %v2592_v9, 0.0  ;;  %v2555_v19 = vpop.f32.mrb[55].mxu0  ;;  %v2596_v20 = vpop.f32.mrb[67].mxu1 }
 0x443   : > { %v2599_v21 = vmax.f32 %v2553_v11, 0.0  ;;  %v2601_v22 = vmax.f32 %v2594_v12, 0.0 }
 0x444   : > { %v2602_v28 = vpack.c.bf16 %v2598_v16, %v2598_v16  ;;  %v2604_v29 = vpack.c.bf16 %v2600_v18, %v2600_v18 }
 0x445   : > { %v2603_v24 = vpack.c.bf16 %v2599_v21, %v2599_v21  ;;  %v2605_v27 = vpack.c.bf16 %v2601_v22, %v2601_v22 }
 0x447   : > { %2895 = vmatprep.mubr.bf16.mxu0 %v2603_v24  ;;  %2935 = vmatprep.mubr.bf16.mxu1 %v2605_v27 }
 0x448   : > { %2896 = vmatmul.mubr.bf16.vlgmr.msra.gmra.mrb[56].mxu0 %v2602_v28  ;;  %2936 = vmatmul.mubr.bf16.vlgmr.msra.gmra.mrb[68].mxu1 %v2604_v29 }
 0x51b   : > { %v3464_v30 = vpop.f32.mrb[56].mxu0  ;;  %v3486_v32 = vpop.f32.mrb[68].mxu1 }
 0x51c   : > { %v3465_v25 = vpop.f32.mrb[57].mxu0  ;;  %v3487_v31 = vpop.f32.mrb[69].mxu1 }
 0x51d   : > { %v3466_v33 = vadd.f32 %v3465_v25, %v3464_v30  ;;  %v3488_v34 = vadd.f32 %v3487_v31, %v3486_v32  ;;  %v3467_v35 = vpop.f32.mrb[58].mxu0  ;;  %v3489_v36 = vpop.f32.mrb[70].mxu1 }
 0x51e   : > { %v3468_v17 = vpop.f32.mrb[59].mxu0  ;;  %v3490_v37 = vpop.f32.mrb[71].mxu1 }
 0x51f   : > { %v2898_v38 = vadd.f32 %v3466_v33, %v2670_v15 }
 0x521   : > { %v2938_v40 = vadd.f32 %v3488_v34, %v2898_v38 }
 0x523   : > { %2943 = vst [vmem:[%s378_s26] sm:$0x1] %v2938_v40 }
 0x524   : > { %3935 = shalt.err (!%p3932_p3)
}
 0x525   : > { %s3936_s15 = scalar_lea.hbm %s4722_s29, 16  ;;  %s3940_s30 = scalar_lea.hbm %s4775_s11, 32 }
 0x526   : > { %p3937_p4 = scmp.ne.s32.totalorder %s4722_s29, %s3936_s15  ;;  %p3941_p9 = scmp.lt.u32.totalorder %s4722_s29, %s4775_s11 }
 0x527   : > { %p3942_p10 = scmp.lt.u32.totalorder %s3940_s30, %s3936_s15  ;;  %p3944_p12 = scmp.lt.u32.totalorder %s3936_s15, %s4722_s29 }
 0x528   : > { %p3938_p7 = pnand %p3937_p4, %p4088_p5 }
 0x529   : > { %p3943_p11 = por %p3942_p10, %p3941_p9 }
 0x52a   : > { %p3939_p8 = pneg %p3938_p7 }
 0x52b   : > { %p3945_p13 = por %p3944_p12, %p3943_p11 }
 0x52d   : > { %p3946_p0 = pnand %p3945_p13, %p3939_p8 }
 0x52f   : > { %3949 = shalt.err (!%p3946_p0)
}
 0x530   : > { %3728 = dma.vmem_to_hbm [thread:$0]  (%p4088_p5), %s4724_s22, 16, %s4722_s29, %s2945_s13  }
 0x531 PF: > { %p3734_p1 = scmp.ge.s32.totalorder %s3984_s20, 2  ;;  %s2969_s14 = sand.u32 1, %s3972_s17  }
 0x532   : > { %s2970_s12 = scalar_lea.sflag [#allocation3], %s2969_s14 }
 0x533   : > { %p3731_p2 = pnand %p3734_p1, %p4092_p6 }
 0x535   : > { %3967 = dma.done.wait (!%p3731_p2), %s2970_s12, 16  }
 0x536   : > { %3969 = vsyncadd (!%p3731_p2), %s2970_s12, 4294967280  ;;  %s4779_s16 = sld [smem:[#allocation5_spill]]  ;;  %p21_p3 = scmp.ge.s32.totalorder %s4075_s23, 4  }
 0x537   : > { %s4780_s17 = smov %s3976_s18  ;;  %s4781_s18 = smov %s3980_s19 }
 0x538   : > { %s4783_s20 = smov %s4075_s23  ;;  %23 = sbr.rel (!%p21_p3) target bundleno = 3 (0x3), region = 122 }
 0x53c   : > { %s4782_s19 = smov %s4779_s16 }
 0x53f   :  { %2974 = vsyncpa [#allocation3], 1 }
 0x540   :  { %2976 = vsyncpa [#allocation3 + $0x1], 1 }

</bundles_post_ra>
